<compile_context>
chip_gen: v7x
topology: tpu7x:2x2x1
jax: 0.10.0
libtpu: 0.0.40
codegen_flags: <defaults>
</compile_context>

<pallas_src>
import functools

import jax
import jax.numpy as jnp
from jax import lax
from jax.experimental import pallas as pl
from jax.experimental.pallas import tpu as pltpu


# ----------------------------- model constants -----------------------------
N_IN = 28 * 28        # 784
N_H1 = 100            # layer-1 hidden size (logical)
N_H2 = 10             # layer-2 hidden size / #classes (logical)
H1P = 128             # layer-1 hidden padded to one full lane tile
H2P = 128             # layer-2 hidden padded to one full lane tile
DECAY = 0.9
THRESHOLD = 2.0
PENALTY_THRESHOLD = 2.0
# dtype fed to the MXU. Recurrence/softmax math stays f32 on all chips.
MATMUL_DTYPE = jnp.bfloat16


def _reset_inner(inner):
    """inner - (penalty/threshold) * inner * (fired gate), f32."""
    if PENALTY_THRESHOLD == THRESHOLD:
        # ratio == 1.0 -> full reset of fired neurons (fewer VPU ops)
        return jnp.where(inner > THRESHOLD, 0.0, inner)
    gate = (inner > THRESHOLD).astype(inner.dtype)
    return inner - (PENALTY_THRESHOLD / THRESHOLD) * inner * gate


def _spiking_kernel(r_ref, x_ref, w1_ref, b1_ref, w2_ref, b2_ref, out_ref,
                    exc_ref, feed_ref, *, n_time_steps, begin_eval, tile_b):
    """One batch tile of the whole SNN forward.

    r_ref : (T, TILE_B, 784) MATMUL_DTYPE   per-step random activations
    x_ref : (TILE_B, 784)    MATMUL_DTYPE   flattened input
    w1_ref: (784, 128)       MATMUL_DTYPE   layer-1 weight (cols 100.. zero)
    b1_ref: (1, 128)         f32            layer-1 bias   (zero padded)
    w2_ref: (128, 128)       MATMUL_DTYPE   layer-2 weight (rows 100.. / cols 10.. zero)
    b2_ref: (1, 128)         f32            layer-2 bias   (zero padded)
    out_ref:(TILE_B, 128)    f32            log_softmax over first 10 lanes
    exc_ref:(T*TILE_B, 128)  f32 scratch    batched excitation (reused L1 then L2)
    feed_ref:(T*TILE_B,128)  f32 scratch    layer-1 DELAYED spike outputs
    """
    T, Bt = n_time_steps, tile_b
    mxu_dtype = w1_ref.dtype
    unroll = T <= 16            # short horizons: give the LLO scheduler the body

    # ---- input conversion + layer-1 excitation for ALL T steps: one MXU call ----
    xi = (r_ref[...] * x_ref[...][None, :, :]).reshape(T * Bt, N_IN)
    exc_ref[...] = (jnp.dot(xi, w1_ref[...], preferred_element_type=jnp.float32)
                    + b1_ref[...])

    # ---- layer-1 recurrence (pure f32 VPU); record DELAYED outputs in scratch ----
    def l1_step(t, carry):
        inner1, outer1 = carry
        feed_ref[pl.ds(t * Bt, Bt), :] = outer1        # layer 2 sees *previous* output
        inner1 = exc_ref[pl.ds(t * Bt, Bt), :] + inner1 * DECAY
        outer1 = jnp.maximum(inner1 - THRESHOLD, 0.0)  # spikes from pre-reset state
        return _reset_inner(inner1), outer1

    zeros_h1 = jnp.zeros((Bt, H1P), jnp.float32)
    _ = lax.fori_loop(0, T, l1_step, (zeros_h1, zeros_h1), unroll=unroll)

    # ---- layer-2 excitation for ALL steps: one MXU call (reuse exc scratch) ----
    exc_ref[...] = (jnp.dot(feed_ref[...].astype(mxu_dtype), w2_ref[...],
                            preferred_element_type=jnp.float32) + b2_ref[...])

    # ---- layer-2 recurrence; out[t] is the DELAYED inner state ----
    def l2_step(t, carry):
        inner2, acc = carry
        acc = acc + jnp.where(t >= begin_eval, inner2, 0.0)   # state before update
        inner2 = exc_ref[pl.ds(t * Bt, Bt), :] + inner2 * DECAY
        return _reset_inner(inner2), acc

    zeros_h2 = jnp.zeros((Bt, H2P), jnp.float32)
    _, acc = lax.fori_loop(0, T, l2_step, (zeros_h2, zeros_h2), unroll=unroll)

    # ---- mean over kept steps, log_softmax over the 10 real classes ----
    mean_out = acc * (1.0 / float(T - begin_eval))            # (Bt, 128)
    lane = lax.broadcasted_iota(jnp.int32, (Bt, H2P), 1)
    masked = jnp.where(lane < N_H2, mean_out, -1e30)          # padded lanes -> ~0 prob
    m = jnp.max(masked, axis=-1, keepdims=True)
    z = masked - m
    lse = jnp.log(jnp.sum(jnp.exp(z), axis=-1, keepdims=True))
    out_ref[...] = z - lse


def _round_up(v, m):
    return (v + m - 1) // m * m


def _pad2d(a, rows, cols, dtype):
    a = jnp.asarray(a, jnp.float32)
    return jnp.pad(a, ((0, rows - a.shape[0]), (0, cols - a.shape[1]))).astype(dtype)


def spiking_net_forward(x, params, rand_acts, *, n_time_steps, begin_eval,
                        tile_b=None):
    """x: (B, C, H, W) f32 NCHW; rand_acts: (T, B, C*H*W) uniform[0,1)."""
    assert 0 <= begin_eval < n_time_steps, "begin_eval must be in [0, n_time_steps)"
    T = n_time_steps
    B = x.shape[0]
    assert rand_acts.shape == (T, B, N_IN)

    mxu_dtype = jnp.dtype(MATMUL_DTYPE)
    pack = 16 if mxu_dtype.itemsize == 2 else 8          # sublane packing of mxu dtype
    if tile_b is None:
        # Keep M = T*tile_b MXU-friendly while leaving multiple tiles for the
        # "parallel" batch grid (dual TensorCore on v7x) at training batch sizes.
        tile_b = min(128, _round_up(B, pack))
    tile_b = _round_up(tile_b, pack)
    Bp = _round_up(B, tile_b)

    # rand stays in its natural (T, B, 784) layout; only the dtype cast (for the
    # MXU) and — iff the batch is ragged — a zero pad touch it before the kernel.
    x_flat = x.reshape(B, -1).astype(mxu_dtype)          # (B, 784), same as .view
    r = rand_acts.astype(mxu_dtype)                      # (T, B, 784)
    if Bp != B:
        x_flat = jnp.pad(x_flat, ((0, Bp - B), (0, 0)))
        r = jnp.pad(r, ((0, 0), (0, Bp - B), (0, 0)))

    w1, b1, w2, b2 = params                              # (in, out) layout
    w1p = _pad2d(w1, N_IN, H1P, mxu_dtype)
    b1p = _pad2d(b1, 1, H1P, jnp.float32)
    w2p = _pad2d(w2, H1P, H2P, mxu_dtype)
    b2p = _pad2d(b2, 1, H2P, jnp.float32)

    kernel = functools.partial(_spiking_kernel, n_time_steps=T,
                               begin_eval=begin_eval, tile_b=tile_b)

    n_tiles = Bp // tile_b
    grid_spec = pltpu.PrefetchScalarGridSpec(
        num_scalar_prefetch=0,
        grid=(n_tiles,),
        in_specs=[
            pl.BlockSpec((T, tile_b, N_IN), lambda b: (0, b, 0)),   # r (pipelined DMA)
            pl.BlockSpec((tile_b, N_IN), lambda b: (b, 0)),         # x
            pl.BlockSpec((N_IN, H1P), lambda b: (0, 0)),            # w1 (resident)
            pl.BlockSpec((1, H1P), lambda b: (0, 0)),               # b1
            pl.BlockSpec((H1P, H2P), lambda b: (0, 0)),             # w2
            pl.BlockSpec((1, H2P), lambda b: (0, 0)),               # b2
        ],
        out_specs=pl.BlockSpec((tile_b, H2P), lambda b: (b, 0)),
        scratch_shapes=[
            pltpu.VMEM((T * tile_b, H1P), jnp.float32),   # excitation (L1, reused L2)
            pltpu.VMEM((T * tile_b, H1P), jnp.float32),   # delayed L1 spike outputs
        ],
    )

    # Explicit VMEM budget: double-buffered tiles + resident weights + scratch + slack.
    itm = mxu_dtype.itemsize
    resident = (3 * T * tile_b * N_IN * itm              # r tile x2 buffers + xi temp
                + 2 * tile_b * N_IN * itm                # x tile x2
                + 2 * (N_IN * H1P + H1P * H2P) * itm     # weights x2 buffers
                + 4 * H2P * 4                            # biases
                + 2 * tile_b * H2P * 4                   # out tile x2
                + 2 * T * tile_b * H1P * 4)              # exc + feed scratch
    vmem_limit = int(min(4 * resident + (4 << 20), 64 << 20))   # 64 MiB = v7x physical

    flops = 2 * T * Bp * (N_IN * H1P + H1P * H2P) + 12 * T * Bp * (H1P + H2P)
    bytes_accessed = ((r.size + x_flat.size + w1p.size + w2p.size) * itm
                      + (b1p.size + b2p.size + Bp * H2P) * 4)
    cost = pl.CostEstimate(flops=int(flops), transcendentals=int(Bp * (H2P + 1)),
                           bytes_accessed=int(bytes_accessed))

    out_pad = pl.pallas_call(
        kernel,
        out_shape=jax.ShapeDtypeStruct((Bp, H2P), jnp.float32),
        grid_spec=grid_spec,
        compiler_params=pltpu.CompilerParams(
            dimension_semantics=("parallel",),
            vmem_limit_bytes=vmem_limit),
        cost_estimate=cost,
    )(r, x_flat, w1p, b1p, w2p, b2p)

    # Drop batch / class padding outside the kernel.
    return out_pad[:B, :N_H2]


def init_params(key):
    """Xavier-uniform weights (as the module does), torch-Linear-default biases."""
    k1, k2, k3, k4 = jax.random.split(key, 4)

    def xavier(k, fan_in, fan_out):
        limit = jnp.sqrt(6.0 / (fan_in + fan_out))
        return jax.random.uniform(k, (fan_in, fan_out), jnp.float32, -limit, limit)

    def bias(k, fan_in, n):
        bound = 1.0 / jnp.sqrt(float(fan_in))
        return jax.random.uniform(k, (1, n), jnp.float32, -bound, bound)

    return (xavier(k1, N_IN, N_H1), bias(k2, N_IN, N_H1),
            xavier(k3, N_H1, N_H2), bias(k4, N_H1, N_H2))


def reference_forward(x, params, rand_acts, *, n_time_steps, begin_eval):
    """Pure-JAX mirror of PyTorch SpikingNet.forward (verification only).

    Matmul inputs are cast to MATMUL_DTYPE exactly like the kernel, while all
    state / recurrence / softmax math stays f32, so any kernel-vs-reference
    mismatch is a real kernel bug rather than dtype noise.  Set MATMUL_DTYPE =
    jnp.float32 to recover bit-exact PyTorch-f32 matmul semantics end to end.
    """
    md = MATMUL_DTYPE
    B = x.shape[0]
    xf = x.reshape(B, -1).astype(md)
    w1, b1, w2, b2 = params
    w1m, w2m = w1.astype(md), w2.astype(md)
    ratio = PENALTY_THRESHOLD / THRESHOLD
    inner1 = jnp.zeros((B, N_H1), jnp.float32)
    outer1 = jnp.zeros((B, N_H1), jnp.float32)
    inner2 = jnp.zeros((B, N_H2), jnp.float32)
    outs = []
    for t in range(n_time_steps):
        xi = rand_acts[t].astype(md) * xf
        feed = outer1                                   # layer-1's delayed output
        e1 = jnp.dot(xi, w1m, preferred_element_type=jnp.float32) + b1
        ni1 = e1 + inner1 * DECAY
        outer1 = jnp.maximum(ni1 - THRESHOLD, 0.0)
        inner1 = ni1 - ratio * ni1 * (outer1 > 0).astype(jnp.float32)
        outs.append(inner2)                             # layer-2's delayed state
        e2 = jnp.dot(feed.astype(md), w2m, preferred_element_type=jnp.float32) + b2
        ni2 = e2 + inner2 * DECAY
        no2 = jnp.maximum(ni2 - THRESHOLD, 0.0)
        inner2 = ni2 - ratio * ni2 * (no2 > 0).astype(jnp.float32)
    mean_out = jnp.mean(jnp.stack(outs[begin_eval:], axis=0), axis=0)
    return jax.nn.log_softmax(mean_out, axis=-1)


if __name__ == "__main__":
    B = 2
    n_time_steps = 8
    begin_eval = 2

    root = jax.random.PRNGKey(0)
    k_params, k_x, k_rand = jax.random.split(root, 3)

    params = init_params(k_params)
    x = jax.random.normal(k_x, (B, 1, 28, 28), jnp.float32)     # NCHW input
    # torch.rand(x.shape) drawn fresh per time step -> pre-generate (T, B, 784)
    rand_acts = jax.random.uniform(k_rand, (n_time_steps, B, N_IN), jnp.float32)

    out = spiking_net_forward(x, params, rand_acts,
                              n_time_steps=n_time_steps, begin_eval=begin_eval)
    out = jax.block_until_ready(out)

    assert out.shape == (B, N_H2)
    assert bool(jnp.all(jnp.isfinite(out)))
    # log_softmax rows must sum to ~1 in probability space
    assert bool(jnp.allclose(jnp.sum(jnp.exp(out), axis=-1), 1.0, atol=1e-5))

    # Correctness against a pure-JAX, dtype-matched mirror of the PyTorch module.
    ref = reference_forward(x, params, rand_acts,
                            n_time_steps=n_time_steps, begin_eval=begin_eval)
    assert bool(jnp.allclose(out, ref, atol=5e-3, rtol=5e-3)), (
        "max abs diff vs reference: %f" % float(jnp.max(jnp.abs(out - ref))))

    print("KERNEL_OK")
</pallas_src>

<mosaic_0001>
module attributes {stable_mosaic.version = 11 : i64} {
  func.func @_spiking_kernel(%arg0: i32, %arg1: memref<8x16x784xbf16, #tpu.memory_space<vmem>>, %arg2: memref<16x784xbf16, #tpu.memory_space<vmem>>, %arg3: memref<784x128xbf16, #tpu.memory_space<vmem>>, %arg4: memref<1x128xf32, #tpu.memory_space<vmem>>, %arg5: memref<128x128xbf16, #tpu.memory_space<vmem>>, %arg6: memref<1x128xf32, #tpu.memory_space<vmem>>, %arg7: memref<16x128xf32, #tpu.memory_space<vmem>>, %arg8: memref<128x128xf32, #tpu.memory_space<vmem>>, %arg9: memref<128x128xf32, #tpu.memory_space<vmem>>) attributes {dimension_semantics = [#tpu.dimension_semantics<parallel>], iteration_bounds = array<i64: 1>, scalar_prefetch = 0 : i64, scratch_operands = 2 : i64, tpu.core_type = #tpu.core_type<tc>, window_params = [{transform_indices = @transform_0, window_bounds = array<i64: 8, 16, 784>}, {transform_indices = @transform_1, window_bounds = array<i64: 16, 784>}, {pipeline_mode = #tpu.pipeline_mode<synchronous>, transform_indices = @transform_2, window_bounds = array<i64: 784, 128>}, {pipeline_mode = #tpu.pipeline_mode<synchronous>, transform_indices = @transform_3, window_bounds = array<i64: 1, 128>}, {pipeline_mode = #tpu.pipeline_mode<synchronous>, transform_indices = @transform_4, window_bounds = array<i64: 128, 128>}, {pipeline_mode = #tpu.pipeline_mode<synchronous>, transform_indices = @transform_5, window_bounds = array<i64: 1, 128>}, {transform_indices = @transform_6, window_bounds = array<i64: 16, 128>}]} {
    %c0 = arith.constant 0 : index
    %c0_0 = arith.constant 0 : index
    %c0_1 = arith.constant 0 : index
    %0 = vector.load %arg1[%c0, %c0_0, %c0_1] : memref<8x16x784xbf16, #tpu.memory_space<vmem>>, vector<8x16x784xbf16>
    %c0_2 = arith.constant 0 : index
    %c0_3 = arith.constant 0 : index
    %1 = vector.load %arg2[%c0_2, %c0_3] : memref<16x784xbf16, #tpu.memory_space<vmem>>, vector<16x784xbf16>
    %2 = vector.shape_cast %1 : vector<16x784xbf16> to vector<1x16x784xbf16>
    %3 = vector.broadcast %2 : vector<1x16x784xbf16> to vector<8x16x784xbf16>
    %4 = arith.mulf %0, %3 : vector<8x16x784xbf16>
    %5 = vector.shape_cast %4 : vector<8x16x784xbf16> to vector<128x784xbf16>
    %c0_4 = arith.constant 0 : index
    %c0_5 = arith.constant 0 : index
    %6 = vector.load %arg3[%c0_4, %c0_5] : memref<784x128xbf16, #tpu.memory_space<vmem>>, vector<784x128xbf16>
    %cst = arith.constant dense<0.000000e+00> : vector<128x128xf32>
    %7 = tpu.matmul %5, %6, %cst {dimension_numbers = #tpu.dot_dimension_numbers<[1], [0], [0], [1], [0, 0, 1, 1], [], []>} : vector<128x784xbf16>, vector<784x128xbf16>, vector<128x128xf32> -> vector<128x128xf32>
    %c0_6 = arith.constant 0 : index
    %c0_7 = arith.constant 0 : index
    %8 = vector.load %arg4[%c0_6, %c0_7] : memref<1x128xf32, #tpu.memory_space<vmem>>, vector<1x128xf32>
    %9 = vector.broadcast %8 : vector<1x128xf32> to vector<128x128xf32>
    %10 = arith.addf %7, %9 : vector<128x128xf32>
    %c0_8 = arith.constant 0 : index
    %c0_9 = arith.constant 0 : index
    %11 = vector.load %arg8[%c0_8, %c0_9] : memref<128x128xf32, #tpu.memory_space<vmem>>, vector<128x128xf32>
    tpu.vector_store %arg8[%c0_8, %c0_9], %10 {strides = array<i32>} : memref<128x128xf32, #tpu.memory_space<vmem>>, vector<128x128xf32>,
    %cst_10 = arith.constant 0.000000e+00 : f32
    %12 = vector.broadcast %cst_10 : f32 to vector<16x128xf32>
    %c0_i32 = arith.constant 0 : i32
    %c16_i32 = arith.constant 16 : i32
    %13 = arith.muli %c0_i32, %c16_i32 : i32
    %14 = arith.index_cast %13 : i32 to index
    %c0_11 = arith.constant 0 : index
    %15 = vector.load %arg9[%14, %c0_11] : memref<128x128xf32, #tpu.memory_space<vmem>>, vector<16x128xf32>
    tpu.vector_store %arg9[%14, %c0_11], %12 {strides = array<i32>} : memref<128x128xf32, #tpu.memory_space<vmem>>, vector<16x128xf32>,
    %c16_i32_12 = arith.constant 16 : i32
    %16 = arith.muli %c0_i32, %c16_i32_12 : i32
    %17 = arith.index_cast %16 : i32 to index
    %c0_13 = arith.constant 0 : index
    %18 = vector.load %arg8[%17, %c0_13] : memref<128x128xf32, #tpu.memory_space<vmem>>, vector<16x128xf32>
    %cst_14 = arith.constant 0.899999976 : f32
    %19 = vector.broadcast %cst_14 : f32 to vector<16x128xf32>
    %20 = arith.mulf %12, %19 : vector<16x128xf32>
    %21 = arith.addf %18, %20 : vector<16x128xf32>
    %cst_15 = arith.constant 2.000000e+00 : f32
    %22 = vector.broadcast %cst_15 : f32 to vector<16x128xf32>
    %23 = arith.subf %21, %22 : vector<16x128xf32>
    %cst_16 = arith.constant 0.000000e+00 : f32
    %24 = vector.broadcast %cst_16 : f32 to vector<16x128xf32>
    %25 = arith.maximumf %23, %24 : vector<16x128xf32>
    %cst_17 = arith.constant 2.000000e+00 : f32
    %26 = vector.broadcast %cst_17 : f32 to vector<16x128xf32>
    %27 = arith.cmpf ogt, %21, %26 : vector<16x128xf32>
    %cst_18 = arith.constant 0.000000e+00 : f32
    %28 = vector.broadcast %cst_18 : f32 to vector<16x128xf32>
    %29 = arith.select %27, %28, %21 : vector<16x128xi1>, vector<16x128xf32>
    %c1_i32 = arith.constant 1 : i32
    %c16_i32_19 = arith.constant 16 : i32
    %30 = arith.muli %c1_i32, %c16_i32_19 : i32
    %31 = arith.index_cast %30 : i32 to index
    %c0_20 = arith.constant 0 : index
    %32 = vector.load %arg9[%31, %c0_20] : memref<128x128xf32, #tpu.memory_space<vmem>>, vector<16x128xf32>
    tpu.vector_store %arg9[%31, %c0_20], %25 {strides = array<i32>} : memref<128x128xf32, #tpu.memory_space<vmem>>, vector<16x128xf32>,
    %c16_i32_21 = arith.constant 16 : i32
    %33 = arith.muli %c1_i32, %c16_i32_21 : i32
    %34 = arith.index_cast %33 : i32 to index
    %c0_22 = arith.constant 0 : index
    %35 = vector.load %arg8[%34, %c0_22] : memref<128x128xf32, #tpu.memory_space<vmem>>, vector<16x128xf32>
    %cst_23 = arith.constant 0.899999976 : f32
    %36 = vector.broadcast %cst_23 : f32 to vector<16x128xf32>
    %37 = arith.mulf %29, %36 : vector<16x128xf32>
    %38 = arith.addf %35, %37 : vector<16x128xf32>
    %cst_24 = arith.constant 2.000000e+00 : f32
    %39 = vector.broadcast %cst_24 : f32 to vector<16x128xf32>
    %40 = arith.subf %38, %39 : vector<16x128xf32>
    %cst_25 = arith.constant 0.000000e+00 : f32
    %41 = vector.broadcast %cst_25 : f32 to vector<16x128xf32>
    %42 = arith.maximumf %40, %41 : vector<16x128xf32>
    %cst_26 = arith.constant 2.000000e+00 : f32
    %43 = vector.broadcast %cst_26 : f32 to vector<16x128xf32>
    %44 = arith.cmpf ogt, %38, %43 : vector<16x128xf32>
    %cst_27 = arith.constant 0.000000e+00 : f32
    %45 = vector.broadcast %cst_27 : f32 to vector<16x128xf32>
    %46 = arith.select %44, %45, %38 : vector<16x128xi1>, vector<16x128xf32>
    %c2_i32 = arith.constant 2 : i32
    %c16_i32_28 = arith.constant 16 : i32
    %47 = arith.muli %c2_i32, %c16_i32_28 : i32
    %48 = arith.index_cast %47 : i32 to index
    %c0_29 = arith.constant 0 : index
    %49 = vector.load %arg9[%48, %c0_29] : memref<128x128xf32, #tpu.memory_space<vmem>>, vector<16x128xf32>
    tpu.vector_store %arg9[%48, %c0_29], %42 {strides = array<i32>} : memref<128x128xf32, #tpu.memory_space<vmem>>, vector<16x128xf32>,
    %c16_i32_30 = arith.constant 16 : i32
    %50 = arith.muli %c2_i32, %c16_i32_30 : i32
    %51 = arith.index_cast %50 : i32 to index
    %c0_31 = arith.constant 0 : index
    %52 = vector.load %arg8[%51, %c0_31] : memref<128x128xf32, #tpu.memory_space<vmem>>, vector<16x128xf32>
    %cst_32 = arith.constant 0.899999976 : f32
    %53 = vector.broadcast %cst_32 : f32 to vector<16x128xf32>
    %54 = arith.mulf %46, %53 : vector<16x128xf32>
    %55 = arith.addf %52, %54 : vector<16x128xf32>
    %cst_33 = arith.constant 2.000000e+00 : f32
    %56 = vector.broadcast %cst_33 : f32 to vector<16x128xf32>
    %57 = arith.subf %55, %56 : vector<16x128xf32>
    %cst_34 = arith.constant 0.000000e+00 : f32
    %58 = vector.broadcast %cst_34 : f32 to vector<16x128xf32>
    %59 = arith.maximumf %57, %58 : vector<16x128xf32>
    %cst_35 = arith.constant 2.000000e+00 : f32
    %60 = vector.broadcast %cst_35 : f32 to vector<16x128xf32>
    %61 = arith.cmpf ogt, %55, %60 : vector<16x128xf32>
    %cst_36 = arith.constant 0.000000e+00 : f32
    %62 = vector.broadcast %cst_36 : f32 to vector<16x128xf32>
    %63 = arith.select %61, %62, %55 : vector<16x128xi1>, vector<16x128xf32>
    %c3_i32 = arith.constant 3 : i32
    %c16_i32_37 = arith.constant 16 : i32
    %64 = arith.muli %c3_i32, %c16_i32_37 : i32
    %65 = arith.index_cast %64 : i32 to index
    %c0_38 = arith.constant 0 : index
    %66 = vector.load %arg9[%65, %c0_38] : memref<128x128xf32, #tpu.memory_space<vmem>>, vector<16x128xf32>
    tpu.vector_store %arg9[%65, %c0_38], %59 {strides = array<i32>} : memref<128x128xf32, #tpu.memory_space<vmem>>, vector<16x128xf32>,
    %c16_i32_39 = arith.constant 16 : i32
    %67 = arith.muli %c3_i32, %c16_i32_39 : i32
    %68 = arith.index_cast %67 : i32 to index
    %c0_40 = arith.constant 0 : index
    %69 = vector.load %arg8[%68, %c0_40] : memref<128x128xf32, #tpu.memory_space<vmem>>, vector<16x128xf32>
    %cst_41 = arith.constant 0.899999976 : f32
    %70 = vector.broadcast %cst_41 : f32 to vector<16x128xf32>
    %71 = arith.mulf %63, %70 : vector<16x128xf32>
    %72 = arith.addf %69, %71 : vector<16x128xf32>
    %cst_42 = arith.constant 2.000000e+00 : f32
    %73 = vector.broadcast %cst_42 : f32 to vector<16x128xf32>
    %74 = arith.subf %72, %73 : vector<16x128xf32>
    %cst_43 = arith.constant 0.000000e+00 : f32
    %75 = vector.broadcast %cst_43 : f32 to vector<16x128xf32>
    %76 = arith.maximumf %74, %75 : vector<16x128xf32>
    %cst_44 = arith.constant 2.000000e+00 : f32
    %77 = vector.broadcast %cst_44 : f32 to vector<16x128xf32>
    %78 = arith.cmpf ogt, %72, %77 : vector<16x128xf32>
    %cst_45 = arith.constant 0.000000e+00 : f32
    %79 = vector.broadcast %cst_45 : f32 to vector<16x128xf32>
    %80 = arith.select %78, %79, %72 : vector<16x128xi1>, vector<16x128xf32>
    %c4_i32 = arith.constant 4 : i32
    %c16_i32_46 = arith.constant 16 : i32
    %81 = arith.muli %c4_i32, %c16_i32_46 : i32
    %82 = arith.index_cast %81 : i32 to index
    %c0_47 = arith.constant 0 : index
    %83 = vector.load %arg9[%82, %c0_47] : memref<128x128xf32, #tpu.memory_space<vmem>>, vector<16x128xf32>
    tpu.vector_store %arg9[%82, %c0_47], %76 {strides = array<i32>} : memref<128x128xf32, #tpu.memory_space<vmem>>, vector<16x128xf32>,
    %c16_i32_48 = arith.constant 16 : i32
    %84 = arith.muli %c4_i32, %c16_i32_48 : i32
    %85 = arith.index_cast %84 : i32 to index
    %c0_49 = arith.constant 0 : index
    %86 = vector.load %arg8[%85, %c0_49] : memref<128x128xf32, #tpu.memory_space<vmem>>, vector<16x128xf32>
    %cst_50 = arith.constant 0.899999976 : f32
    %87 = vector.broadcast %cst_50 : f32 to vector<16x128xf32>
    %88 = arith.mulf %80, %87 : vector<16x128xf32>
    %89 = arith.addf %86, %88 : vector<16x128xf32>
    %cst_51 = arith.constant 2.000000e+00 : f32
    %90 = vector.broadcast %cst_51 : f32 to vector<16x128xf32>
    %91 = arith.subf %89, %90 : vector<16x128xf32>
    %cst_52 = arith.constant 0.000000e+00 : f32
    %92 = vector.broadcast %cst_52 : f32 to vector<16x128xf32>
    %93 = arith.maximumf %91, %92 : vector<16x128xf32>
    %cst_53 = arith.constant 2.000000e+00 : f32
    %94 = vector.broadcast %cst_53 : f32 to vector<16x128xf32>
    %95 = arith.cmpf ogt, %89, %94 : vector<16x128xf32>
    %cst_54 = arith.constant 0.000000e+00 : f32
    %96 = vector.broadcast %cst_54 : f32 to vector<16x128xf32>
    %97 = arith.select %95, %96, %89 : vector<16x128xi1>, vector<16x128xf32>
    %c5_i32 = arith.constant 5 : i32
    %c16_i32_55 = arith.constant 16 : i32
    %98 = arith.muli %c5_i32, %c16_i32_55 : i32
    %99 = arith.index_cast %98 : i32 to index
    %c0_56 = arith.constant 0 : index
    %100 = vector.load %arg9[%99, %c0_56] : memref<128x128xf32, #tpu.memory_space<vmem>>, vector<16x128xf32>
    tpu.vector_store %arg9[%99, %c0_56], %93 {strides = array<i32>} : memref<128x128xf32, #tpu.memory_space<vmem>>, vector<16x128xf32>,
    %c16_i32_57 = arith.constant 16 : i32
    %101 = arith.muli %c5_i32, %c16_i32_57 : i32
    %102 = arith.index_cast %101 : i32 to index
    %c0_58 = arith.constant 0 : index
    %103 = vector.load %arg8[%102, %c0_58] : memref<128x128xf32, #tpu.memory_space<vmem>>, vector<16x128xf32>
    %cst_59 = arith.constant 0.899999976 : f32
    %104 = vector.broadcast %cst_59 : f32 to vector<16x128xf32>
    %105 = arith.mulf %97, %104 : vector<16x128xf32>
    %106 = arith.addf %103, %105 : vector<16x128xf32>
    %cst_60 = arith.constant 2.000000e+00 : f32
    %107 = vector.broadcast %cst_60 : f32 to vector<16x128xf32>
    %108 = arith.subf %106, %107 : vector<16x128xf32>
    %cst_61 = arith.constant 0.000000e+00 : f32
    %109 = vector.broadcast %cst_61 : f32 to vector<16x128xf32>
    %110 = arith.maximumf %108, %109 : vector<16x128xf32>
    %cst_62 = arith.constant 2.000000e+00 : f32
    %111 = vector.broadcast %cst_62 : f32 to vector<16x128xf32>
    %112 = arith.cmpf ogt, %106, %111 : vector<16x128xf32>
    %cst_63 = arith.constant 0.000000e+00 : f32
    %113 = vector.broadcast %cst_63 : f32 to vector<16x128xf32>
    %114 = arith.select %112, %113, %106 : vector<16x128xi1>, vector<16x128xf32>
    %c6_i32 = arith.constant 6 : i32
    %c16_i32_64 = arith.constant 16 : i32
    %115 = arith.muli %c6_i32, %c16_i32_64 : i32
    %116 = arith.index_cast %115 : i32 to index
    %c0_65 = arith.constant 0 : index
    %117 = vector.load %arg9[%116, %c0_65] : memref<128x128xf32, #tpu.memory_space<vmem>>, vector<16x128xf32>
    tpu.vector_store %arg9[%116, %c0_65], %110 {strides = array<i32>} : memref<128x128xf32, #tpu.memory_space<vmem>>, vector<16x128xf32>,
    %c16_i32_66 = arith.constant 16 : i32
    %118 = arith.muli %c6_i32, %c16_i32_66 : i32
    %119 = arith.index_cast %118 : i32 to index
    %c0_67 = arith.constant 0 : index
    %120 = vector.load %arg8[%119, %c0_67] : memref<128x128xf32, #tpu.memory_space<vmem>>, vector<16x128xf32>
    %cst_68 = arith.constant 0.899999976 : f32
    %121 = vector.broadcast %cst_68 : f32 to vector<16x128xf32>
    %122 = arith.mulf %114, %121 : vector<16x128xf32>
    %123 = arith.addf %120, %122 : vector<16x128xf32>
    %cst_69 = arith.constant 2.000000e+00 : f32
    %124 = vector.broadcast %cst_69 : f32 to vector<16x128xf32>
    %125 = arith.subf %123, %124 : vector<16x128xf32>
    %cst_70 = arith.constant 0.000000e+00 : f32
    %126 = vector.broadcast %cst_70 : f32 to vector<16x128xf32>
    %127 = arith.maximumf %125, %126 : vector<16x128xf32>
    %cst_71 = arith.constant 2.000000e+00 : f32
    %128 = vector.broadcast %cst_71 : f32 to vector<16x128xf32>
    %129 = arith.cmpf ogt, %123, %128 : vector<16x128xf32>
    %cst_72 = arith.constant 0.000000e+00 : f32
    %130 = vector.broadcast %cst_72 : f32 to vector<16x128xf32>
    %131 = arith.select %129, %130, %123 : vector<16x128xi1>, vector<16x128xf32>
    %c7_i32 = arith.constant 7 : i32
    %c16_i32_73 = arith.constant 16 : i32
    %132 = arith.muli %c7_i32, %c16_i32_73 : i32
    %133 = arith.index_cast %132 : i32 to index
    %c0_74 = arith.constant 0 : index
    %134 = vector.load %arg9[%133, %c0_74] : memref<128x128xf32, #tpu.memory_space<vmem>>, vector<16x128xf32>
    tpu.vector_store %arg9[%133, %c0_74], %127 {strides = array<i32>} : memref<128x128xf32, #tpu.memory_space<vmem>>, vector<16x128xf32>,
    %c16_i32_75 = arith.constant 16 : i32
    %135 = arith.muli %c7_i32, %c16_i32_75 : i32
    %136 = arith.index_cast %135 : i32 to index
    %c0_76 = arith.constant 0 : index
    %137 = vector.load %arg8[%136, %c0_76] : memref<128x128xf32, #tpu.memory_space<vmem>>, vector<16x128xf32>
    %cst_77 = arith.constant 0.899999976 : f32
    %138 = vector.broadcast %cst_77 : f32 to vector<16x128xf32>
    %139 = arith.mulf %131, %138 : vector<16x128xf32>
    %140 = arith.addf %137, %139 : vector<16x128xf32>
    %cst_78 = arith.constant 2.000000e+00 : f32
    %141 = vector.broadcast %cst_78 : f32 to vector<16x128xf32>
    %142 = arith.subf %140, %141 : vector<16x128xf32>
    %cst_79 = arith.constant 0.000000e+00 : f32
    %143 = vector.broadcast %cst_79 : f32 to vector<16x128xf32>
    %144 = arith.maximumf %142, %143 : vector<16x128xf32>
    %cst_80 = arith.constant 2.000000e+00 : f32
    %145 = vector.broadcast %cst_80 : f32 to vector<16x128xf32>
    %146 = arith.cmpf ogt, %140, %145 : vector<16x128xf32>
    %cst_81 = arith.constant 0.000000e+00 : f32
    %147 = vector.broadcast %cst_81 : f32 to vector<16x128xf32>
    %148 = arith.select %146, %147, %140 : vector<16x128xi1>, vector<16x128xf32>
    %c8_i32 = arith.constant 8 : i32
    %c0_82 = arith.constant 0 : index
    %c0_83 = arith.constant 0 : index
    %149 = vector.load %arg9[%c0_82, %c0_83] : memref<128x128xf32, #tpu.memory_space<vmem>>, vector<128x128xf32>
    %150 = arith.truncf %149 : vector<128x128xf32> to vector<128x128xbf16>
    %c0_84 = arith.constant 0 : index
    %c0_85 = arith.constant 0 : index
    %151 = vector.load %arg5[%c0_84, %c0_85] : memref<128x128xbf16, #tpu.memory_space<vmem>>, vector<128x128xbf16>
    %cst_86 = arith.constant dense<0.000000e+00> : vector<128x128xf32>
    %152 = tpu.matmul %150, %151, %cst_86 {dimension_numbers = #tpu.dot_dimension_numbers<[1], [0], [0], [1], [0, 0, 1, 1], [], []>} : vector<128x128xbf16>, vector<128x128xbf16>, vector<128x128xf32> -> vector<128x128xf32>
    %c0_87 = arith.constant 0 : index
    %c0_88 = arith.constant 0 : index
    %153 = vector.load %arg6[%c0_87, %c0_88] : memref<1x128xf32, #tpu.memory_space<vmem>>, vector<1x128xf32>
    %154 = vector.broadcast %153 : vector<1x128xf32> to vector<128x128xf32>
    %155 = arith.addf %152, %154 : vector<128x128xf32>
    %c0_89 = arith.constant 0 : index
    %c0_90 = arith.constant 0 : index
    %156 = vector.load %arg8[%c0_89, %c0_90] : memref<128x128xf32, #tpu.memory_space<vmem>>, vector<128x128xf32>
    tpu.vector_store %arg8[%c0_89, %c0_90], %155 {strides = array<i32>} : memref<128x128xf32, #tpu.memory_space<vmem>>, vector<128x128xf32>,
    %cst_91 = arith.constant 0.000000e+00 : f32
    %157 = vector.broadcast %cst_91 : f32 to vector<16x128xf32>
    %c0_i32_92 = arith.constant 0 : i32
    %c2_i32_93 = arith.constant 2 : i32
    %158 = arith.cmpi sge, %c0_i32_92, %c2_i32_93 : i32
    %cst_94 = arith.constant 0.000000e+00 : f32
    %159 = vector.broadcast %cst_94 : f32 to vector<16x128xf32>
    %160 = arith.select %158, %157, %159 : vector<16x128xf32>
    %161 = arith.addf %157, %160 : vector<16x128xf32>
    %c16_i32_95 = arith.constant 16 : i32
    %162 = arith.muli %c0_i32_92, %c16_i32_95 : i32
    %163 = arith.index_cast %162 : i32 to index
    %c0_96 = arith.constant 0 : index
    %164 = vector.load %arg8[%163, %c0_96] : memref<128x128xf32, #tpu.memory_space<vmem>>, vector<16x128xf32>
    %cst_97 = arith.constant 0.899999976 : f32
    %165 = vector.broadcast %cst_97 : f32 to vector<16x128xf32>
    %166 = arith.mulf %157, %165 : vector<16x128xf32>
    %167 = arith.addf %164, %166 : vector<16x128xf32>
    %cst_98 = arith.constant 2.000000e+00 : f32
    %168 = vector.broadcast %cst_98 : f32 to vector<16x128xf32>
    %169 = arith.cmpf ogt, %167, %168 : vector<16x128xf32>
    %cst_99 = arith.constant 0.000000e+00 : f32
    %170 = vector.broadcast %cst_99 : f32 to vector<16x128xf32>
    %171 = arith.select %169, %170, %167 : vector<16x128xi1>, vector<16x128xf32>
    %c1_i32_100 = arith.constant 1 : i32
    %c2_i32_101 = arith.constant 2 : i32
    %172 = arith.cmpi sge, %c1_i32_100, %c2_i32_101 : i32
    %cst_102 = arith.constant 0.000000e+00 : f32
    %173 = vector.broadcast %cst_102 : f32 to vector<16x128xf32>
    %174 = arith.select %172, %171, %173 : vector<16x128xf32>
    %175 = arith.addf %161, %174 : vector<16x128xf32>
    %c16_i32_103 = arith.constant 16 : i32
    %176 = arith.muli %c1_i32_100, %c16_i32_103 : i32
    %177 = arith.index_cast %176 : i32 to index
    %c0_104 = arith.constant 0 : index
    %178 = vector.load %arg8[%177, %c0_104] : memref<128x128xf32, #tpu.memory_space<vmem>>, vector<16x128xf32>
    %cst_105 = arith.constant 0.899999976 : f32
    %179 = vector.broadcast %cst_105 : f32 to vector<16x128xf32>
    %180 = arith.mulf %171, %179 : vector<16x128xf32>
    %181 = arith.addf %178, %180 : vector<16x128xf32>
    %cst_106 = arith.constant 2.000000e+00 : f32
    %182 = vector.broadcast %cst_106 : f32 to vector<16x128xf32>
    %183 = arith.cmpf ogt, %181, %182 : vector<16x128xf32>
    %cst_107 = arith.constant 0.000000e+00 : f32
    %184 = vector.broadcast %cst_107 : f32 to vector<16x128xf32>
    %185 = arith.select %183, %184, %181 : vector<16x128xi1>, vector<16x128xf32>
    %c2_i32_108 = arith.constant 2 : i32
    %c2_i32_109 = arith.constant 2 : i32
    %186 = arith.cmpi sge, %c2_i32_108, %c2_i32_109 : i32
    %cst_110 = arith.constant 0.000000e+00 : f32
    %187 = vector.broadcast %cst_110 : f32 to vector<16x128xf32>
    %188 = arith.select %186, %185, %187 : vector<16x128xf32>
    %189 = arith.addf %175, %188 : vector<16x128xf32>
    %c16_i32_111 = arith.constant 16 : i32
    %190 = arith.muli %c2_i32_108, %c16_i32_111 : i32
    %191 = arith.index_cast %190 : i32 to index
    %c0_112 = arith.constant 0 : index
    %192 = vector.load %arg8[%191, %c0_112] : memref<128x128xf32, #tpu.memory_space<vmem>>, vector<16x128xf32>
    %cst_113 = arith.constant 0.899999976 : f32
    %193 = vector.broadcast %cst_113 : f32 to vector<16x128xf32>
    %194 = arith.mulf %185, %193 : vector<16x128xf32>
    %195 = arith.addf %192, %194 : vector<16x128xf32>
    %cst_114 = arith.constant 2.000000e+00 : f32
    %196 = vector.broadcast %cst_114 : f32 to vector<16x128xf32>
    %197 = arith.cmpf ogt, %195, %196 : vector<16x128xf32>
    %cst_115 = arith.constant 0.000000e+00 : f32
    %198 = vector.broadcast %cst_115 : f32 to vector<16x128xf32>
    %199 = arith.select %197, %198, %195 : vector<16x128xi1>, vector<16x128xf32>
    %c3_i32_116 = arith.constant 3 : i32
    %c2_i32_117 = arith.constant 2 : i32
    %200 = arith.cmpi sge, %c3_i32_116, %c2_i32_117 : i32
    %cst_118 = arith.constant 0.000000e+00 : f32
    %201 = vector.broadcast %cst_118 : f32 to vector<16x128xf32>
    %202 = arith.select %200, %199, %201 : vector<16x128xf32>
    %203 = arith.addf %189, %202 : vector<16x128xf32>
    %c16_i32_119 = arith.constant 16 : i32
    %204 = arith.muli %c3_i32_116, %c16_i32_119 : i32
    %205 = arith.index_cast %204 : i32 to index
    %c0_120 = arith.constant 0 : index
    %206 = vector.load %arg8[%205, %c0_120] : memref<128x128xf32, #tpu.memory_space<vmem>>, vector<16x128xf32>
    %cst_121 = arith.constant 0.899999976 : f32
    %207 = vector.broadcast %cst_121 : f32 to vector<16x128xf32>
    %208 = arith.mulf %199, %207 : vector<16x128xf32>
    %209 = arith.addf %206, %208 : vector<16x128xf32>
    %cst_122 = arith.constant 2.000000e+00 : f32
    %210 = vector.broadcast %cst_122 : f32 to vector<16x128xf32>
    %211 = arith.cmpf ogt, %209, %210 : vector<16x128xf32>
    %cst_123 = arith.constant 0.000000e+00 : f32
    %212 = vector.broadcast %cst_123 : f32 to vector<16x128xf32>
    %213 = arith.select %211, %212, %209 : vector<16x128xi1>, vector<16x128xf32>
    %c4_i32_124 = arith.constant 4 : i32
    %c2_i32_125 = arith.constant 2 : i32
    %214 = arith.cmpi sge, %c4_i32_124, %c2_i32_125 : i32
    %cst_126 = arith.constant 0.000000e+00 : f32
    %215 = vector.broadcast %cst_126 : f32 to vector<16x128xf32>
    %216 = arith.select %214, %213, %215 : vector<16x128xf32>
    %217 = arith.addf %203, %216 : vector<16x128xf32>
    %c16_i32_127 = arith.constant 16 : i32
    %218 = arith.muli %c4_i32_124, %c16_i32_127 : i32
    %219 = arith.index_cast %218 : i32 to index
    %c0_128 = arith.constant 0 : index
    %220 = vector.load %arg8[%219, %c0_128] : memref<128x128xf32, #tpu.memory_space<vmem>>, vector<16x128xf32>
    %cst_129 = arith.constant 0.899999976 : f32
    %221 = vector.broadcast %cst_129 : f32 to vector<16x128xf32>
    %222 = arith.mulf %213, %221 : vector<16x128xf32>
    %223 = arith.addf %220, %222 : vector<16x128xf32>
    %cst_130 = arith.constant 2.000000e+00 : f32
    %224 = vector.broadcast %cst_130 : f32 to vector<16x128xf32>
    %225 = arith.cmpf ogt, %223, %224 : vector<16x128xf32>
    %cst_131 = arith.constant 0.000000e+00 : f32
    %226 = vector.broadcast %cst_131 : f32 to vector<16x128xf32>
    %227 = arith.select %225, %226, %223 : vector<16x128xi1>, vector<16x128xf32>
    %c5_i32_132 = arith.constant 5 : i32
    %c2_i32_133 = arith.constant 2 : i32
    %228 = arith.cmpi sge, %c5_i32_132, %c2_i32_133 : i32
    %cst_134 = arith.constant 0.000000e+00 : f32
    %229 = vector.broadcast %cst_134 : f32 to vector<16x128xf32>
    %230 = arith.select %228, %227, %229 : vector<16x128xf32>
    %231 = arith.addf %217, %230 : vector<16x128xf32>
    %c16_i32_135 = arith.constant 16 : i32
    %232 = arith.muli %c5_i32_132, %c16_i32_135 : i32
    %233 = arith.index_cast %232 : i32 to index
    %c0_136 = arith.constant 0 : index
    %234 = vector.load %arg8[%233, %c0_136] : memref<128x128xf32, #tpu.memory_space<vmem>>, vector<16x128xf32>
    %cst_137 = arith.constant 0.899999976 : f32
    %235 = vector.broadcast %cst_137 : f32 to vector<16x128xf32>
    %236 = arith.mulf %227, %235 : vector<16x128xf32>
    %237 = arith.addf %234, %236 : vector<16x128xf32>
    %cst_138 = arith.constant 2.000000e+00 : f32
    %238 = vector.broadcast %cst_138 : f32 to vector<16x128xf32>
    %239 = arith.cmpf ogt, %237, %238 : vector<16x128xf32>
    %cst_139 = arith.constant 0.000000e+00 : f32
    %240 = vector.broadcast %cst_139 : f32 to vector<16x128xf32>
    %241 = arith.select %239, %240, %237 : vector<16x128xi1>, vector<16x128xf32>
    %c6_i32_140 = arith.constant 6 : i32
    %c2_i32_141 = arith.constant 2 : i32
    %242 = arith.cmpi sge, %c6_i32_140, %c2_i32_141 : i32
    %cst_142 = arith.constant 0.000000e+00 : f32
    %243 = vector.broadcast %cst_142 : f32 to vector<16x128xf32>
    %244 = arith.select %242, %241, %243 : vector<16x128xf32>
    %245 = arith.addf %231, %244 : vector<16x128xf32>
    %c16_i32_143 = arith.constant 16 : i32
    %246 = arith.muli %c6_i32_140, %c16_i32_143 : i32
    %247 = arith.index_cast %246 : i32 to index
    %c0_144 = arith.constant 0 : index
    %248 = vector.load %arg8[%247, %c0_144] : memref<128x128xf32, #tpu.memory_space<vmem>>, vector<16x128xf32>
    %cst_145 = arith.constant 0.899999976 : f32
    %249 = vector.broadcast %cst_145 : f32 to vector<16x128xf32>
    %250 = arith.mulf %241, %249 : vector<16x128xf32>
    %251 = arith.addf %248, %250 : vector<16x128xf32>
    %cst_146 = arith.constant 2.000000e+00 : f32
    %252 = vector.broadcast %cst_146 : f32 to vector<16x128xf32>
    %253 = arith.cmpf ogt, %251, %252 : vector<16x128xf32>
    %cst_147 = arith.constant 0.000000e+00 : f32
    %254 = vector.broadcast %cst_147 : f32 to vector<16x128xf32>
    %255 = arith.select %253, %254, %251 : vector<16x128xi1>, vector<16x128xf32>
    %c7_i32_148 = arith.constant 7 : i32
    %c2_i32_149 = arith.constant 2 : i32
    %256 = arith.cmpi sge, %c7_i32_148, %c2_i32_149 : i32
    %cst_150 = arith.constant 0.000000e+00 : f32
    %257 = vector.broadcast %cst_150 : f32 to vector<16x128xf32>
    %258 = arith.select %256, %255, %257 : vector<16x128xf32>
    %259 = arith.addf %245, %258 : vector<16x128xf32>
    %c16_i32_151 = arith.constant 16 : i32
    %260 = arith.muli %c7_i32_148, %c16_i32_151 : i32
    %261 = arith.index_cast %260 : i32 to index
    %c0_152 = arith.constant 0 : index
    %262 = vector.load %arg8[%261, %c0_152] : memref<128x128xf32, #tpu.memory_space<vmem>>, vector<16x128xf32>
    %cst_153 = arith.constant 0.899999976 : f32
    %263 = vector.broadcast %cst_153 : f32 to vector<16x128xf32>
    %264 = arith.mulf %255, %263 : vector<16x128xf32>
    %265 = arith.addf %262, %264 : vector<16x128xf32>
    %cst_154 = arith.constant 2.000000e+00 : f32
    %266 = vector.broadcast %cst_154 : f32 to vector<16x128xf32>
    %267 = arith.cmpf ogt, %265, %266 : vector<16x128xf32>
    %cst_155 = arith.constant 0.000000e+00 : f32
    %268 = vector.broadcast %cst_155 : f32 to vector<16x128xf32>
    %269 = arith.select %267, %268, %265 : vector<16x128xi1>, vector<16x128xf32>
    %c8_i32_156 = arith.constant 8 : i32
    %cst_157 = arith.constant 0.166666672 : f32
    %270 = vector.broadcast %cst_157 : f32 to vector<16x128xf32>
    %271 = arith.mulf %259, %270 : vector<16x128xf32>
    %272 = tpu.iota {dimensions = array<i32: 1>} : vector<16x128xi32>
    %c10_i32 = arith.constant 10 : i32
    %273 = vector.broadcast %c10_i32 : i32 to vector<16x128xi32>
    %274 = arith.cmpi slt, %272, %273 : vector<16x128xi32>
    %cst_158 = arith.constant -1.000000e+30 : f32
    %275 = vector.broadcast %cst_158 : f32 to vector<16x128xf32>
    %276 = arith.select %274, %271, %275 : vector<16x128xi1>, vector<16x128xf32>
    %cst_159 = arith.constant dense<0xFF800000> : vector<16xf32>
    %277 = vector.multi_reduction <maximumf>, %276, %cst_159 [1] : vector<16x128xf32> to vector<16xf32>
    %278 = vector.shape_cast %277 : vector<16xf32> to vector<16x1xf32>
    %279 = vector.broadcast %278 : vector<16x1xf32> to vector<16x128xf32>
    %280 = arith.subf %276, %279 : vector<16x128xf32>
    %281 = math.exp %280 : vector<16x128xf32>
    %cst_160 = arith.constant dense<0.000000e+00> : vector<16xf32>
    %282 = vector.multi_reduction <add>, %281, %cst_160 [1] : vector<16x128xf32> to vector<16xf32>
    %283 = vector.shape_cast %282 : vector<16xf32> to vector<16x1xf32>
    %284 = math.log %283 : vector<16x1xf32>
    %285 = vector.broadcast %284 : vector<16x1xf32> to vector<16x128xf32>
    %286 = arith.subf %280, %285 : vector<16x128xf32>
    %c0_161 = arith.constant 0 : index
    %c0_162 = arith.constant 0 : index
    %287 = vector.load %arg7[%c0_161, %c0_162] : memref<16x128xf32, #tpu.memory_space<vmem>>, vector<16x128xf32>
    tpu.vector_store %arg7[%c0_161, %c0_162], %286 {strides = array<i32>} : memref<16x128xf32, #tpu.memory_space<vmem>>, vector<16x128xf32>,
    return
  }
  func.func @transform_0(%arg0: i32) -> (i32, i32, i32) {
    %c0_i32 = arith.constant 0 : i32
    %c0_i32_0 = arith.constant 0 : i32
    %c0_i32_1 = arith.constant 0 : i32
    return %c0_i32, %arg0, %c0_i32_0 : i32, i32, i32
  }
  func.func @transform_1(%arg0: i32) -> (i32, i32) {
    %c0_i32 = arith.constant 0 : i32
    %c0_i32_0 = arith.constant 0 : i32
    return %arg0, %c0_i32 : i32, i32
  }
  func.func @transform_2(%arg0: i32) -> (i32, i32) {
    %c0_i32 = arith.constant 0 : i32
    %c0_i32_0 = arith.constant 0 : i32
    %c0_i32_1 = arith.constant 0 : i32
    return %c0_i32, %c0_i32_0 : i32, i32
  }
  func.func @transform_3(%arg0: i32) -> (i32, i32) {
    %c0_i32 = arith.constant 0 : i32
    %c0_i32_0 = arith.constant 0 : i32
    %c0_i32_1 = arith.constant 0 : i32
    return %c0_i32, %c0_i32_0 : i32, i32
  }
  func.func @transform_4(%arg0: i32) -> (i32, i32) {
    %c0_i32 = arith.constant 0 : i32
    %c0_i32_0 = arith.constant 0 : i32
    %c0_i32_1 = arith.constant 0 : i32
    return %c0_i32, %c0_i32_0 : i32, i32
  }
  func.func @transform_5(%arg0: i32) -> (i32, i32) {
    %c0_i32 = arith.constant 0 : i32
    %c0_i32_0 = arith.constant 0 : i32
    %c0_i32_1 = arith.constant 0 : i32
    return %c0_i32, %c0_i32_0 : i32, i32
  }
  func.func @transform_6(%arg0: i32) -> (i32, i32) {
    %c0_i32 = arith.constant 0 : i32
    %c0_i32_0 = arith.constant 0 : i32
    return %arg0, %c0_i32 : i32, i32
  }
}

</mosaic_0001>

<bundles_post_ra>
// kernel: tpu_custom_call.1
= control target key start
LH: loop header
LB: loop body
LE: loop exit
PB: predicated region body
PF: predicated region fallthrough
CT: control target
= control target key end

     0   :  { %11 = vsyncpa [#allocation5], 0  ;;  %s2667_s0 = inlined_call_operand.hbm [shape: bf16[8,16,784], index: 0, kind: input, shape index: {}]   ;;  %s2668_s1 = inlined_call_operand.hbm [shape: bf16[16,784], index: 1, kind: input, shape index: {}]   ;;  %s2669_s2 = inlined_call_operand.hbm [shape: bf16[784,128], index: 2, kind: input, shape index: {}]   ;;  %s2670_s3 = inlined_call_operand.vmem [shape: f32[1,128], index: 3, kind: input, shape index: {}]   ;;  %s2671_s4 = inlined_call_operand.hbm [shape: bf16[128,128], index: 4, kind: input, shape index: {}]   ;;  %s2672_s5 = inlined_call_operand.vmem [shape: f32[1,128], index: 5, kind: input, shape index: {}]   ;;  %s2673_s6 = inlined_call_operand.hbm [shape: f32[16,128], index: 6, kind: output, shape index: {}]  }
   0x1   :  { %12 = vsyncpa [#allocation8], 0 }
   0x2   :  { %13 = vsyncpa [#allocation11], 0 }
   0x3   :  { %14 = vsyncpa [#allocation6], 0  ;;  %s2367_s21 = smov [#allocation7]   ;;  %s2368_s23 = smov [#allocation4]  }
   0x4   :  { %s32_s22 = sshll.u32 %s2367_s21, 4  ;;  %s20_s24 = sshll.u32 %s2368_s23, 4  ;;  %s33_s22 = int_to_ptr.vmem [resolvable:$true] %s32_s22  ;;  %s2414_s24 = int_to_ptr.vmem [resolvable:$true] %s20_s24 }
   0x5   :  { %s2249_s27 = scalar_lea.hbm %s2668_s1, 896 }
   0x6   :  { %p2250_p0 = scmp.ne.s32.totalorder %s2668_s1, %s2249_s27  ;;  %p2253_p1 = scmp.lt.u32.totalorder %s2249_s27, %s2668_s1 }
   0x8   :  { %p2255_p2 = pnand %p2253_p1, %p2250_p0 }
   0xa   :  { %2258 = shalt.err (!%p2255_p2)
}
   0xb   :  { %s2259_s8 = scalar_lea.vmem %s33_s22, 896  ;;  %p2264_p4 = scmp.lt.s32.totalorder %s33_s22, %s33_s22 }
   0xc   :  { %p2260_p3 = scmp.ne.s32.totalorder %s33_s22, %s2259_s8  ;;  %p2265_p5 = scmp.lt.s32.totalorder %s2259_s8, %s2259_s8 }
   0xe   :  { %p2266_p6 = por %p2265_p5, %p2264_p4 }
  0x10   :  { %p2267_p7 = pnand %p2266_p6, %p2260_p3 }
  0x12   :  { %2270 = shalt.err (!%p2267_p7)
}
  0x13   :  { %s2369_s9 = smov 448   ;;  %s2370_s10 = smov 28  }
  0x14   :  { %38 = dma.hbm_to_vmem [thread:$0]  %s2668_s1, 896, %s33_s22, [#allocation8], %s2369_s9, %s2369_s9, %s2370_s10  }
  0x15   :  { %s2271_s15 = scalar_lea.hbm %s2667_s0, 7168 }
  0x16   :  { %p2272_p8 = scmp.ne.s32.totalorder %s2667_s0, %s2271_s15  ;;  %p2275_p9 = scmp.lt.u32.totalorder %s2271_s15, %s2667_s0 }
  0x18   :  { %p2277_p10 = pnand %p2275_p9, %p2272_p8 }
  0x1a   :  { %2280 = shalt.err (!%p2277_p10)
}
  0x1b   :  { %s2281_s20 = scalar_lea.vmem %s2414_s24, 7168  ;;  %p2286_p12 = scmp.lt.s32.totalorder %s2414_s24, %s2414_s24 }
  0x1c   :  { %p2282_p11 = scmp.ne.s32.totalorder %s2414_s24, %s2281_s20  ;;  %p2287_p13 = scmp.lt.s32.totalorder %s2281_s20, %s2281_s20 }
  0x1e   :  { %p2288_p0 = por %p2287_p13, %p2286_p12 }
  0x20   :  { %p2289_p1 = pnand %p2288_p0, %p2282_p11 }
  0x22   :  { %2292 = shalt.err (!%p2289_p1)
}
  0x23   :  { %26 = dma.hbm_to_vmem [thread:$0]  %s2667_s0, 7168, %s2414_s24, [#allocation5], %s2369_s9, %s2369_s9, %s2370_s10  }
  0x24   :  { %s2371_s22 = smov [#allocation9]   ;;  %s2293_s27 = scalar_lea.hbm %s2669_s2, 6272 }
  0x25   :  { %s44_s23 = sshll.u32 %s2371_s22, 4  ;;  %p2294_p2 = scmp.ne.s32.totalorder %s2669_s2, %s2293_s27  ;;  %s45_s23 = int_to_ptr.vmem [resolvable:$true] %s44_s23 }
  0x26   :  { %p2297_p3 = scmp.lt.u32.totalorder %s2293_s27, %s2669_s2 }
  0x28   :  { %p2299_p4 = pnand %p2297_p3, %p2294_p2 }
  0x2a   :  { %2302 = shalt.err (!%p2299_p4)
}
  0x2b   :  { %s2303_s8 = scalar_lea.vmem %s45_s23, 6272  ;;  %p2308_p6 = scmp.lt.s32.totalorder %s45_s23, %s45_s23 }
  0x2c   :  { %p2304_p5 = scmp.ne.s32.totalorder %s45_s23, %s2303_s8  ;;  %p2309_p7 = scmp.lt.s32.totalorder %s2303_s8, %s2303_s8 }
  0x2e   :  { %p2310_p8 = por %p2309_p7, %p2308_p6 }
  0x30   :  { %p2311_p9 = pnand %p2310_p8, %p2304_p5 }
  0x32   :  { %2314 = shalt.err (!%p2311_p9)
}
  0x33   :  { %s2372_s0 = smov 64   ;;  %s2373_s24 = smov 4  }
  0x34   :  { %50 = dma.hbm_to_vmem [thread:$0]  %s2669_s2, 6272, %s45_s23, [#allocation8], %s2372_s0, %s2372_s0, %s2373_s24  }
  0x35   :  { %s2374_s11 = smov [#allocation10]   ;;  %s2315_s15 = scalar_lea.hbm %s2671_s4, 1024 }
  0x36   :  { %s58_s12 = sshll.u32 %s2374_s11, 4  ;;  %p2316_p10 = scmp.ne.s32.totalorder %s2671_s4, %s2315_s15  ;;  %s59_s12 = int_to_ptr.vmem [resolvable:$true] %s58_s12 }
  0x37   :  { %p2319_p11 = scmp.lt.u32.totalorder %s2315_s15, %s2671_s4 }
  0x39   :  { %p2321_p12 = pnand %p2319_p11, %p2316_p10 }
  0x3b   :  { %2324 = shalt.err (!%p2321_p12)
}
  0x3c   :  { %s2325_s20 = scalar_lea.vmem %s59_s12, 1024  ;;  %p2330_p0 = scmp.lt.s32.totalorder %s59_s12, %s59_s12 }
  0x3d   :  { %p2326_p13 = scmp.ne.s32.totalorder %s59_s12, %s2325_s20  ;;  %p2331_p1 = scmp.lt.s32.totalorder %s2325_s20, %s2325_s20 }
  0x3f   :  { %p2332_p2 = por %p2331_p1, %p2330_p0 }
  0x41   :  { %p2333_p3 = pnand %p2332_p2, %p2326_p13 }
  0x43   :  { %2336 = shalt.err (!%p2333_p3)
}
  0x44   :  { %64 = dma.hbm_to_vmem [thread:$0]  %s2671_s4, 1024, %s59_s12, [#allocation11], %s2372_s0, %s2372_s0, %s2373_s24  }
  0x45   :  { %2359 = dma.done.wait [#allocation5], 7168  }
  0x46   :  { %2360 = vsyncadd [#allocation5], 4294960128 }
  0x47   :  { %2361 = dma.done.wait [#allocation8], 7168  }
  0x48   :  { %2362 = vsyncadd [#allocation8], 4294960128 }
  0x49   :  { %2363 = dma.done.wait [#allocation11], 1024  }
  0x4a   :  { %2364 = vsyncadd [#allocation11], 4294966272  ;;  %v2184_v0 = vld [vmem:[#allocation9 + $0x40] sm:$0xff]   ;;  %v2188_v4 = vld [vmem:[#allocation9 + $0x48] sm:$0xff]   ;;  %vm895_vm0 = vcmask 130048  }
  0x4b   :  { %v2185_v1 = vld [vmem:[#allocation9] sm:$0xff]   ;;  %1905 = vmatprep.subr.bf16.mxu0 %v2184_v0  ;;  %v2189_v5 = vld [vmem:[#allocation9 + $0x8] sm:$0xff]   ;;  %v2192_v8 = vld [vmem:[#allocation9 + $0x50] sm:$0xff]  }
  0x4c   :  { %v2186_v2 = vld [vmem:[#allocation9 + $0xc0] sm:$0xff]   ;;  %1906 = vmatpush3.bf16.msra.mxu0 %v2185_v1  ;;  %v2190_v6 = vld [vmem:[#allocation9 + $0xc8] sm:$0xff]   ;;  %v2193_v9 = vld [vmem:[#allocation9 + $0x10] sm:$0xff]  }
  0x4d   :  { %v2187_v3 = vld [vmem:[#allocation9 + $0x80] sm:$0xff]   ;;  %1969 = vmatprep.subr.bf16.mxu1 %v2186_v2  ;;  %1907 = vmatprep.subr.bf16.mxu0 %v2188_v4  ;;  %v2191_v7 = vld [vmem:[#allocation9 + $0x88] sm:$0xff]   ;;  %v2194_v10 = vld [vmem:[#allocation9 + $0xd0] sm:$0xff]  }
  0x4e   :  { %1970 = vmatpush3.bf16.msra.mxu1 %v2187_v3  ;;  %v2195_v11 = vld [vmem:[#allocation9 + $0x90] sm:$0xff]   ;;  %v2196_v12 = vld [vmem:[#allocation9 + $0x58] sm:$0xff]   ;;  %v2200_v16 = vld [vmem:[#allocation9 + $0x60] sm:$0xff]  }
  0x4f   :  { %1971 = vmatprep.subr.bf16.mxu1 %v2190_v6  ;;  %v2197_v13 = vld [vmem:[#allocation9 + $0x18] sm:$0xff]   ;;  %v2201_v17 = vld [vmem:[#allocation9 + $0x20] sm:$0xff]   ;;  %v2204_v20 = vld [vmem:[#allocation9 + $0x68] sm:$0xff]  }
  0x50   :  { %1908 = vmatpush3.bf16.msra.mxu0 %v2189_v5  ;;  %v2198_v14 = vld [vmem:[#allocation9 + $0xd8] sm:$0xff]   ;;  %v2202_v18 = vld [vmem:[#allocation9 + $0xe0] sm:$0xff]   ;;  %v2205_v21 = vld [vmem:[#allocation9 + $0x28] sm:$0xff]  }
  0x51   :  { %1909 = vmatprep.subr.bf16.mxu0 %v2192_v8  ;;  %v2199_v15 = vld [vmem:[#allocation9 + $0x98] sm:$0xff]   ;;  %v2203_v19 = vld [vmem:[#allocation9 + $0xa0] sm:$0xff]   ;;  %v2206_v22 = vld [vmem:[#allocation9 + $0xe8] sm:$0xff]  }
  0x52   :  { %1972 = vmatpush3.bf16.msra.mxu1 %v2191_v7  ;;  %v2207_v23 = vld [vmem:[#allocation9 + $0xa8] sm:$0xff]   ;;  %v2208_v24 = vld [vmem:[#allocation9 + $0x70] sm:$0xff]   ;;  %v2212_v28 = vld [vmem:[#allocation9 + $0x78] sm:$0xff]  }
  0x53   :  { %1973 = vmatprep.subr.bf16.mxu1 %v2194_v10  ;;  %v2209_v25 = vld [vmem:[#allocation9 + $0x30] sm:$0xff]   ;;  %v2213_v29 = vld [vmem:[#allocation9 + $0x38] sm:$0xff]   ;;  %v80_v31 = vld [vmem:[#allocation4] sm:$0xff] }
  0x54   :  { %1910 = vmatpush3.bf16.msra.mxu0 %v2193_v9  ;;  %v2210_v26 = vld [vmem:[#allocation9 + $0xf0] sm:$0xff]   ;;  %v2214_v30 = vld [vmem:[#allocation9 + $0xf8] sm:$0xff]   ;;  %v84_v32 = vld [vmem:[#allocation4 + $0x1c] sm:$0xff] }
  0x55   :  { %1911 = vmatprep.subr.bf16.mxu0 %v2196_v12  ;;  %v2211_v27 = vld [vmem:[#allocation9 + $0xb0] sm:$0xff]   ;;  %v2469_v33 = vld [vmem:[#allocation7] sm:$0xff]  ;;  %v2215_v37 = vld [vmem:[#allocation9 + $0xb8] sm:$0xff]  }
  0x56   :  { %1974 = vmatpush3.bf16.msra.mxu1 %v2195_v11  ;;  %v2471_v34 = vld [vmem:[#allocation7 + $0x1c] sm:$0xff]  ;;  %v152_v35 = vmul.bf16 %v2469_v33, %v80_v31  ;;  %v81_v39 = vld [vmem:[#allocation4 + $0x8] sm:$0xff]  ;;  %v92_v49 = vld [vmem:[#allocation4 + $0x54] sm:$0xff] }
  0x57   :  { %1975 = vmatprep.subr.bf16.mxu1 %v2198_v14  ;;  %v156_v36 = vmul.bf16 %v2471_v34, %v84_v32  ;;  %v2216_v38 = vld [vmem:[#allocation9 + $0x140] sm:$0xff]   ;;  %v85_v40 = vld [vmem:[#allocation4 + $0x24] sm:$0xff]  ;;  %v164_v53 = vmul.bf16 %v2471_v34, %v92_v49  ;;  %v96_v61 = vld [vmem:[#allocation4 + $0x70] sm:$0xff] }
  0x58   :  { %1912 = vmatpush3.bf16.msra.mxu0 %v2197_v13  ;;  %v2475_v43 = vld [vmem:[#allocation7 + $0x8] sm:$0xff]  ;;  %v2217_v47 = vld [vmem:[#allocation9 + $0x100] sm:$0xff]   ;;  %v2218_v54 = vld [vmem:[#allocation9 + $0x148] sm:$0xff]   ;;  %v168_v0 = vmul.bf16 %v2469_v33, %v96_v61 }
  0x59   :  { %1913 = vmatprep.subr.bf16.mxu0 %v2200_v16  ;;  %v1770_v41 = vcombine.high %v152_v35, %v156_v36  ;;  %v1769_v42 = vcombine.low %v152_v35, %v156_v36  ;;  %v2477_v44 = vld [vmem:[#allocation7 + $0x24] sm:$0xff]  ;;  %v153_v45 = vmul.bf16 %v2475_v43, %v81_v39  ;;  %v88_v48 = vld [vmem:[#allocation4 + $0x38] sm:$0xff]  ;;  %v100_v62 = vld [vmem:[#allocation4 + $0x8c] sm:$0xff] }
  0x5a   :  { %1976 = vmatpush3.bf16.msra.mxu1 %v2199_v15  ;;  %v157_v46 = vmul.bf16 %v2477_v44, %v85_v40  ;;  %v160_v50 = vmul.bf16 %v2469_v33, %v88_v48  ;;  %v89_v55 = vld [vmem:[#allocation4 + $0x40] sm:$0xff]  ;;  %v172_v1 = vmul.bf16 %v2471_v34, %v100_v62  ;;  %v2220_v2 = vld [vmem:[#allocation9 + $0x150] sm:$0xff]   ;;  %v97_v3 = vld [vmem:[#allocation4 + $0x78] sm:$0xff] }
  0x5b   :  { %1977 = vmatprep.subr.bf16.mxu1 %v2202_v18  ;;  %952 = vmatprep.mubr.bf16.mxu0 %v1770_v41  ;;  %v93_v56 = vld [vmem:[#allocation4 + $0x5c] sm:$0xff]  ;;  %v161_v57 = vmul.bf16 %v2475_v43, %v89_v55  ;;  %v101_v5 = vld [vmem:[#allocation4 + $0x94] sm:$0xff]  ;;  %v169_v6 = vmul.bf16 %v2475_v43, %v97_v3  ;;  %v2221_v9 = vld [vmem:[#allocation9 + $0x110] sm:$0xff]  }
  0x5c   :  { %1914 = vmatpush3.bf16.msra.mxu0 %v2201_v17  ;;  %v1772_v51 = vcombine.high %v153_v45, %v157_v46  ;;  %v1771_v52 = vcombine.low %v153_v45, %v157_v46  ;;  %v165_v58 = vmul.bf16 %v2477_v44, %v93_v56  ;;  %v2219_v59 = vld [vmem:[#allocation9 + $0x108] sm:$0xff]   ;;  %v1777_v60 = vcombine.high %v160_v50, %v164_v53  ;;  %v2222_v10 = vld [vmem:[#allocation9 + $0x180] sm:$0xff]   ;;  %v104_v11 = vld [vmem:[#allocation4 + $0xa8] sm:$0xff] }
  0x5d   :  { %1915 = vmatprep.subr.bf16.mxu0 %v2204_v20  ;;  %v1776_v4 = vcombine.low %v160_v50, %v164_v53  ;;  %v1784_v7 = vcombine.high %v168_v0, %v172_v1  ;;  %v173_v8 = vmul.bf16 %v2477_v44, %v101_v5  ;;  %v108_v12 = vld [vmem:[#allocation4 + $0xc4] sm:$0xff]  ;;  %v2223_v14 = vld [vmem:[#allocation9 + $0x158] sm:$0xff]   ;;  %v176_v17 = vmul.bf16 %v2469_v33, %v104_v11  ;;  %v125_v55 = vld [vmem:[#allocation4 + $0x13c] sm:$0xff] }
  0x5e   :  { %1978 = vmatpush3.bf16.msra.mxu1 %v2203_v19  ;;  %1049 = vmatprep.mubr.bf16.mxu1 %v1772_v51  ;;  %v1779_v63 = vcombine.high %v161_v57, %v165_v58  ;;  %v1778_v13 = vcombine.low %v161_v57, %v165_v58  ;;  %v105_v16 = vld [vmem:[#allocation4 + $0xb0] sm:$0xff]  ;;  %v180_v18 = vmul.bf16 %v2471_v34, %v108_v12  ;;  %v113_v32 = vld [vmem:[#allocation4 + $0xe8] sm:$0xff]  ;;  %v129_v3 = vld [vmem:[#allocation4 + $0x158] sm:$0xff] }
  0x5f   :  { %1979 = vmatprep.subr.bf16.mxu1 %v2206_v22  ;;  %v1786_v15 = vcombine.high %v169_v6, %v173_v8  ;;  %v109_v19 = vld [vmem:[#allocation4 + $0xcc] sm:$0xff]  ;;  %v1783_v22 = vcombine.low %v168_v0, %v172_v1  ;;  %v117_v35 = vld [vmem:[#allocation4 + $0x104] sm:$0xff]  ;;  %v185_v41 = vmul.bf16 %v2475_v43, %v113_v32  ;;  %v124_v48 = vld [vmem:[#allocation4 + $0x134] sm:$0xff] }
  0x60   :  { %1916 = vmatpush3.bf16.msra.mxu0 %v2205_v21  ;;  %v2224_v20 = vld [vmem:[#allocation9 + $0x118] sm:$0xff]   ;;  %v2225_v21 = vld [vmem:[#allocation9 + $0x160] sm:$0xff]   ;;  %v2229_v39 = vld [vmem:[#allocation9 + $0x170] sm:$0xff]   ;;  %v1790_v40 = vcombine.low %v176_v17, %v180_v18  ;;  %v196_v53 = vmul.bf16 %v2471_v34, %v124_v48 }
  0x61   :  { %1917 = vmatprep.subr.bf16.mxu0 %v2208_v24  ;;  %v181_v24 = vmul.bf16 %v2477_v44, %v109_v19  ;;  %v2230_v46 = vld [vmem:[#allocation9 + $0x130] sm:$0xff]   ;;  %v2231_v49 = vld [vmem:[#allocation9 + $0x178] sm:$0xff]  }
  0x62   :  { %1980 = vmatpush3.bf16.msra.mxu1 %v2207_v23  ;;  %v177_v23 = vmul.bf16 %v2475_v43, %v105_v16  ;;  %v2232_v56 = vld [vmem:[#allocation9 + $0x138] sm:$0xff]  }
  0x63   :  { %1981 = vmatprep.subr.bf16.mxu1 %v2210_v26  ;;  %v112_v26 = vld [vmem:[#allocation4 + $0xe0] sm:$0xff]  ;;  %v128_v61 = vld [vmem:[#allocation4 + $0x150] sm:$0xff] }
  0x64   :  { %1918 = vmatpush3.bf16.msra.mxu0 %v2209_v25  ;;  %v1791_v25 = vcombine.high %v176_v17, %v180_v18  ;;  %v1793_v31 = vcombine.high %v177_v23, %v181_v24  ;;  %v184_v36 = vmul.bf16 %v2469_v33, %v112_v26  ;;  %v1792_v50 = vcombine.low %v177_v23, %v181_v24  ;;  %v132_v62 = vld [vmem:[#allocation4 + $0x16c] sm:$0xff] }
  0x65   :  { %1919 = vmatprep.subr.bf16.mxu0 %v2212_v28  ;;  %v116_v28 = vld [vmem:[#allocation4 + $0xfc] sm:$0xff]  ;;  %v200_v1 = vmul.bf16 %v2469_v33, %v128_v61  ;;  %v141_v16 = vld [vmem:[#allocation4 + $0x1ac] sm:$0xff]  ;;  %v115_v61 = vld [vmem:[#allocation4 + $0xf8] sm:$0xf] }
  0x66   :  { %1982 = vmatpush3.bf16.msra.mxu1 %v2211_v27  ;;  %v2226_v27 = vld [vmem:[#allocation9 + $0x120] sm:$0xff]   ;;  %v213_v19 = vmul.bf16 %v2477_v44, %v141_v16  ;;  %v2509_v23 = vld [vmem:[#allocation7 + $0x10] sm:$0xff] }
  0x67   :  { %1983 = vmatprep.subr.bf16.mxu1 %v2214_v30  ;;  %v1785_v30 = vcombine.low %v169_v6, %v173_v8  ;;  %v201_v6 = vmul.bf16 %v2475_v43, %v129_v3  ;;  %v136_v8 = vld [vmem:[#allocation4 + $0x188] sm:$0xff] }
  0x68   :  { %1920 = vmatpush3.bf16.msra.mxu0 %v2213_v29  ;;  %v2227_v29 = vld [vmem:[#allocation9 + $0x168] sm:$0xff]   ;;  %v2511_v24 = vld [vmem:[#allocation7 + $0x2c] sm:$0xff] }
  0x69   :  { %2033 = vmatprep.subr.bf16.mxu0 %v2216_v38  ;;  %v2228_v38 = vld [vmem:[#allocation9 + $0x128] sm:$0xff]  }
  0x6a   :  { %1984 = vmatpush3.bf16.msra.mxu1 %v2215_v37  ;;  %v188_v37 = vmul.bf16 %v2471_v34, %v116_v28  ;;  %v87_v28 = vld [vmem:[#allocation4 + $0x34] sm:$0xf] }
  0x6b   :  { %953 = vmatmul.mubr.bf16.vlgmr.msra.gmra.mrb[0].mxu0 %v1769_v42  ;;  %2122 = vmatprep.subr.bf16.mxu1 %v2222_v10  ;;  %v189_v42 = vmul.bf16 %v2477_v44, %v117_v35  ;;  %v90_v35 = vld [vmem:[#allocation4 + $0x48] sm:$0xff] }
  0x6c   :  { %2034 = vmatpush3.bf16.msra.mxu0 %v2217_v47  ;;  %960 = vmatprep.mubr.bf16.mxu0 %v1777_v60  ;;  %v1798_v45 = vcombine.high %v184_v36, %v188_v37  ;;  %v120_v47 = vld [vmem:[#allocation4 + $0x118] sm:$0xff]  ;;  %v1797_v57 = vcombine.low %v184_v36, %v188_v37  ;;  %v94_v36 = vld [vmem:[#allocation4 + $0x64] sm:$0xff] }
  0x6d   :  { %2035 = vmatprep.subr.bf16.mxu0 %v2218_v54  ;;  %1050 = vmatmul.mubr.bf16.vlgmr.msra.gmra.mrb[0].mxu1 %v1771_v52  ;;  %v1800_v51 = vcombine.high %v185_v41, %v189_v42  ;;  %v192_v52 = vmul.bf16 %v2469_v33, %v120_v47  ;;  %v121_v54 = vld [vmem:[#allocation4 + $0x120] sm:$0xff] }
  0x6e   :  { %1057 = vmatprep.mubr.bf16.mxu1 %v1779_v63  ;;  %2123 = vmatpush3.bf16.msra.mxu1 %v2222_v10  ;;  %v193_v58 = vmul.bf16 %v2475_v43, %v121_v54  ;;  %v1799_v63 = vcombine.low %v185_v41, %v189_v42  ;;  %v162_v41 = vmul.bf16 %v2509_v23, %v90_v35  ;;  %v102_v54 = vld [vmem:[#allocation4 + $0x9c] sm:$0xff]  ;;  %v122_v35 = vld [vmem:[#allocation4 + $0x128] sm:$0xff] }
  0x6f   :  { %v1805_v60 = vcombine.high %v192_v52, %v196_v53  ;;  %v1804_v5 = vcombine.low %v192_v52, %v196_v53  ;;  %v166_v42 = vmul.bf16 %v2511_v24, %v94_v36  ;;  %v98_v53 = vld [vmem:[#allocation4 + $0x80] sm:$0xff] }
  0x70   :  { %2036 = vmatpush3.bf16.msra.mxu0 %v2219_v59  ;;  %v197_v59 = vmul.bf16 %v2477_v44, %v125_v55  ;;  %v126_v36 = vld [vmem:[#allocation4 + $0x144] sm:$0xff] }
  0x71   :  { %2037 = vmatprep.subr.bf16.mxu0 %v2220_v2  ;;  %v204_v2 = vmul.bf16 %v2471_v34, %v132_v62  ;;  %v1781_v52 = vcombine.high %v162_v41, %v166_v42  ;;  %v119_v62 = vld [vmem:[#allocation4 + $0x114] sm:$0xf] }
  0x72   :  { %v1807_v0 = vcombine.high %v193_v58, %v197_v59  ;;  %v1806_v11 = vcombine.low %v193_v58, %v197_v59  ;;  %v111_v58 = vld [vmem:[#allocation4 + $0xdc] sm:$0xf]  ;;  %v170_v59 = vmul.bf16 %v2509_v23, %v98_v53  ;;  %v2237_v53 = vld [vmem:[#allocation10 + $0x20] sm:$0xff]  }
  0x73   :  { %961 = vmatmul.mubr.bf16.gmra.mrb[4].mxu0 %v1776_v4  ;;  %v133_v4 = vld [vmem:[#allocation4 + $0x174] sm:$0xff]  ;;  %v1812_v10 = vcombine.high %v200_v1, %v204_v2  ;;  %v1811_v17 = vcombine.low %v200_v1, %v204_v2  ;;  %v1780_v1 = vcombine.low %v162_v41, %v166_v42  ;;  %v134_v42 = vld [vmem:[#allocation4 + $0x17c] sm:$0xff] }
  0x74   :  { %968 = vmatprep.mubr.bf16.mxu0 %v1784_v7  ;;  %2038 = vmatpush3.bf16.msra.mxu0 %v2221_v9  ;;  %v205_v7 = vmul.bf16 %v2477_v44, %v133_v4  ;;  %v140_v9 = vld [vmem:[#allocation4 + $0x1a4] sm:$0xff]  ;;  %v2517_v44 = vld [vmem:[#allocation7 + $0x34] sm:$0xf] }
  0x75   :  { %2039 = vmatprep.subr.bf16.mxu0 %v2223_v14  ;;  %1058 = vmatmul.mubr.bf16.gmra.mrb[4].mxu1 %v1778_v13  ;;  %v208_v13 = vmul.bf16 %v2469_v33, %v136_v8  ;;  %v212_v14 = vmul.bf16 %v2471_v34, %v140_v9  ;;  %v83_v34 = vld [vmem:[#allocation4 + $0x18] sm:$0xf]  ;;  %v191_v3 = vmul.bf16 %v2517_v44, %v119_v62  ;;  %v123_v9 = vld [vmem:[#allocation4 + $0x130] sm:$0xf] }
  0x76   :  { %1065 = vmatprep.mubr.bf16.mxu1 %v1786_v15  ;;  %v1814_v12 = vcombine.high %v201_v6, %v205_v7  ;;  %v137_v15 = vld [vmem:[#allocation4 + $0x190] sm:$0xff] }
  0x77   :  { %v209_v18 = vmul.bf16 %v2475_v43, %v137_v15  ;;  %v2515_v43 = vld [vmem:[#allocation7 + $0x18] sm:$0xf] }
  0x78   :  { %2040 = vmatpush3.bf16.msra.mxu0 %v2224_v20  ;;  %v1819_v20 = vcombine.high %v208_v13, %v212_v14  ;;  %v187_v2 = vmul.bf16 %v2515_v43, %v115_v61  ;;  %v195_v15 = vmul.bf16 %v2515_v43, %v123_v9 }
  0x79   :  { %2041 = vmatprep.subr.bf16.mxu0 %v2225_v21  ;;  %v82_v21 = vld [vmem:[#allocation4 + $0x10] sm:$0xff]  ;;  %v1821_v33 = vcombine.high %v209_v18, %v213_v19  ;;  %v1820_v37 = vcombine.low %v209_v18, %v213_v19 }
  0x7a   :  { %v154_v26 = vmul.bf16 %v2509_v23, %v82_v21  ;;  %v1803_v8 = vcombine.low %v187_v2, %v191_v3  ;;  %v114_v21 = vld [vmem:[#allocation4 + $0xf0] sm:$0xff] }
  0x7b   :  { %969 = vmatmul.mubr.bf16.gmra.mrb[8].mxu0 %v1783_v22  ;;  %v86_v22 = vld [vmem:[#allocation4 + $0x2c] sm:$0xff] }
  0x7c   :  { %976 = vmatprep.mubr.bf16.mxu0 %v1791_v25  ;;  %2042 = vmatpush3.bf16.msra.mxu0 %v2226_v27  ;;  %v1813_v25 = vcombine.low %v201_v6, %v205_v7  ;;  %v158_v27 = vmul.bf16 %v2511_v24, %v86_v22  ;;  %v110_v6 = vld [vmem:[#allocation4 + $0xd4] sm:$0xff]  ;;  %v118_v22 = vld [vmem:[#allocation4 + $0x10c] sm:$0xff] }
  0x7d   :  { %2043 = vmatprep.subr.bf16.mxu0 %v2227_v29  ;;  %1066 = vmatmul.mubr.bf16.gmra.mrb[8].mxu1 %v1785_v30  ;;  %v1818_v29 = vcombine.low %v208_v13, %v212_v14  ;;  %v155_v30 = vmul.bf16 %v2515_v43, %v83_v34  ;;  %v131_v13 = vld [vmem:[#allocation4 + $0x168] sm:$0xf]  ;;  %v135_v14 = vld [vmem:[#allocation4 + $0x184] sm:$0xf]  ;;  %v139_v34 = vld [vmem:[#allocation4 + $0x1a0] sm:$0xf] }
  0x7e   :  { %1073 = vmatprep.mubr.bf16.mxu1 %v1793_v31  ;;  %v159_v31 = vmul.bf16 %v2517_v44, %v87_v28  ;;  %v1774_v32 = vcombine.high %v154_v26, %v158_v27  ;;  %v203_v18 = vmul.bf16 %v2515_v43, %v131_v13  ;;  %v207_v19 = vmul.bf16 %v2517_v44, %v135_v14 }
  0x7f   :  { %v190_v28 = vmul.bf16 %v2511_v24, %v118_v22 }
  0x80   :  { %2044 = vmatpush3.bf16.msra.mxu0 %v2228_v38  ;;  %v1775_v38 = vcombine.low %v155_v30, %v159_v31 }
  0x81   :  { %2045 = vmatprep.subr.bf16.mxu0 %v2229_v39  ;;  %v91_v39 = vld [vmem:[#allocation4 + $0x50] sm:$0xf] }
  0x82   :  { %v163_v47 = vmul.bf16 %v2515_v43, %v91_v39  ;;  %v198_v39 = vmul.bf16 %v2511_v24, %v126_v36 }
  0x83   :  { %977 = vmatmul.mubr.bf16.gmra.mrb[12].mxu0 %v1790_v40  ;;  %v95_v40 = vld [vmem:[#allocation4 + $0x6c] sm:$0xf] }
  0x84   :  { %984 = vmatprep.mubr.bf16.mxu0 %v1798_v45  ;;  %2046 = vmatpush3.bf16.msra.mxu0 %v2230_v46  ;;  %v99_v45 = vld [vmem:[#allocation4 + $0x88] sm:$0xf]  ;;  %v103_v46 = vld [vmem:[#allocation4 + $0xa4] sm:$0xf]  ;;  %v167_v48 = vmul.bf16 %v2517_v44, %v95_v40 }
  0x85   :  { %2047 = vmatprep.subr.bf16.mxu0 %v2231_v49  ;;  %1074 = vmatmul.mubr.bf16.gmra.mrb[12].mxu1 %v1792_v50  ;;  %v1773_v49 = vcombine.low %v154_v26, %v158_v27  ;;  %v171_v50 = vmul.bf16 %v2515_v43, %v99_v45  ;;  %v143_v26 = vld [vmem:[#allocation4 + $0x1bc] sm:$0xf]  ;;  %v186_v27 = vmul.bf16 %v2509_v23, %v114_v21 }
  0x86   :  { %1081 = vmatprep.mubr.bf16.mxu1 %v1800_v51  ;;  %v175_v51 = vmul.bf16 %v2517_v44, %v103_v46  ;;  %v1782_v55 = vcombine.low %v163_v47, %v167_v48  ;;  %v215_v30 = vmul.bf16 %v2517_v44, %v143_v26  ;;  %v206_v45 = vmul.bf16 %v2511_v24, %v134_v42 }
  0x87   :  { %v1801_v40 = vcombine.low %v186_v27, %v190_v28 }
  0x88   :  { %2048 = vmatpush3.bf16.msra.mxu0 %v2232_v56  ;;  %v1789_v56 = vcombine.low %v171_v50, %v175_v51  ;;  %v2234_v50 = vld [vmem:[#allocation10 + $0x8] sm:$0xff]   ;;  %v2235_v51 = vld [vmem:[#allocation10 + $0x10] sm:$0xff]  }
  0x8b   :  { %985 = vmatmul.mubr.bf16.gmra.mrb[16].mxu0 %v1797_v57  ;;  %v107_v57 = vld [vmem:[#allocation4 + $0xc0] sm:$0xf] }
  0x8c   :  { %992 = vmatprep.mubr.bf16.mxu0 %v1805_v60  ;;  %v174_v60 = vmul.bf16 %v2511_v24, %v102_v54  ;;  %v2238_v54 = vld [vmem:[#allocation10 + $0x28] sm:$0xff]  }
  0x8d   :  { %1082 = vmatmul.mubr.bf16.gmra.mrb[16].mxu1 %v1799_v63  ;;  %v179_v63 = vmul.bf16 %v2515_v43, %v107_v57  ;;  %v2375_v57 = vmov 0.0|0.0  }
  0x8e   :  { %1089 = vmatprep.mubr.bf16.mxu1 %v1807_v0  ;;  %v183_v0 = vmul.bf16 %v2517_v44, %v111_v58  ;;  %v1788_v4 = vcombine.high %v170_v59, %v174_v60 }
  0x90   :  { %v1796_v7 = vcombine.low %v179_v63, %v183_v0 }
  0x93   :  { %993 = vmatmul.mubr.bf16.gmra.mrb[20].mxu0 %v1804_v5  ;;  %v106_v5 = vld [vmem:[#allocation4 + $0xb8] sm:$0xff] }
  0x94   :  { %1000 = vmatprep.mubr.bf16.mxu0 %v1812_v10  ;;  %v127_v10 = vld [vmem:[#allocation4 + $0x14c] sm:$0xf] }
  0x95   :  { %1090 = vmatmul.mubr.bf16.gmra.mrb[20].mxu1 %v1806_v11  ;;  %v178_v11 = vmul.bf16 %v2509_v23, %v106_v5  ;;  %v199_v16 = vmul.bf16 %v2517_v44, %v127_v10 }
  0x96   :  { %1097 = vmatprep.mubr.bf16.mxu1 %v1814_v12  ;;  %v182_v12 = vmul.bf16 %v2511_v24, %v110_v6 }
  0x98   :  { %v1794_v31 = vcombine.low %v178_v11, %v182_v12 }
  0x9b   :  { %1001 = vmatmul.mubr.bf16.gmra.mrb[24].mxu0 %v1811_v17  ;;  %v1787_v17 = vcombine.low %v170_v59, %v174_v60  ;;  %v2558_v59 = vld [vmem:[%s2670_s3] ss:$0 sm:$0xff] }
  0x9c   :  { %1008 = vmatprep.mubr.bf16.mxu0 %v1819_v20  ;;  %v1795_v20 = vcombine.high %v178_v11, %v182_v12 }
  0x9d   :  { %1098 = vmatmul.mubr.bf16.gmra.mrb[24].mxu1 %v1813_v25  ;;  %v1810_v25 = vcombine.low %v195_v15, %v199_v16 }
  0x9e   :  { %1105 = vmatprep.mubr.bf16.mxu1 %v1821_v33  ;;  %v1817_v33 = vcombine.low %v203_v18, %v207_v19 }
  0xa3   :  { %1009 = vmatmul.mubr.bf16.gmra.mrb[28].mxu0 %v1818_v29  ;;  %v211_v29 = vmul.bf16 %v2515_v43, %v139_v34  ;;  %v130_v43 = vld [vmem:[#allocation4 + $0x160] sm:$0xff] }
  0xa4   :  { %1146 = vmatprep.mubr.bf16.mxu0 %v1774_v32  ;;  %v1802_v32 = vcombine.high %v186_v27, %v190_v28  ;;  %v202_v44 = vmul.bf16 %v2509_v23, %v130_v43 }
  0xa5   :  { %1106 = vmatmul.mubr.bf16.gmra.mrb[28].mxu1 %v1820_v37  ;;  %v1824_v37 = vcombine.low %v211_v29, %v215_v30 }
  0xa6   :  { %2124 = vmatprep.mubr.msk.bf16.mxu1 %vm895_vm0, %v1775_v38  ;;  %v194_v38 = vmul.bf16 %v2509_v23, %v122_v35  ;;  %v1816_v47 = vcombine.high %v202_v44, %v206_v45  ;;  %v1815_v48 = vcombine.low %v202_v44, %v206_v45 }
  0xa8   :  { %v1809_v41 = vcombine.high %v194_v38, %v198_v39  ;;  %v1808_v46 = vcombine.low %v194_v38, %v198_v39 }
  0xab   :  { %1147 = vmatmul.mubr.bf16.vlgmr.msra.gmra.mrb[32].mxu0 %v1773_v49  ;;  %v2233_v49 = vld [vmem:[#allocation10] sm:$0xff]  }
  0xac   :  { %1154 = vmatprep.mubr.bf16.mxu0 %v1781_v52  ;;  %2140 = vmatprep.subr.bf16.mxu1 %v2233_v49  ;;  %v2236_v52 = vld [vmem:[#allocation10 + $0x18] sm:$0xff]  }
  0xad   :  { %2125 = vmatmul.mubr.msk.bf16.vlgmr.msra.gmra.mrb[32].mxu1 %vm895_vm0, %v1782_v55  ;;  %v2239_v55 = vld [vmem:[#allocation10 + $0x30] sm:$0xff]  }
  0xae   :  { %2128 = vmatprep.mubr.msk.bf16.mxu1 %vm895_vm0, %v1789_v56  ;;  %2141 = vmatpush3.bf16.msra.mxu1 %v2233_v49  ;;  %v2240_v56 = vld [vmem:[#allocation10 + $0x38] sm:$0xff]  }
  0xaf   :  { %2142 = vmatprep.subr.bf16.mxu1 %v2234_v50 }
  0xb2   :  { %2143 = vmatpush3.bf16.msra.mxu1 %v2234_v50 }
  0xb3   :  { %1155 = vmatmul.mubr.bf16.gmra.mrb[36].mxu0 %v1780_v1  ;;  %2144 = vmatprep.subr.bf16.mxu1 %v2235_v51 }
  0xb4   :  { %1162 = vmatprep.mubr.bf16.mxu0 %v1788_v4 }
  0xb5   :  { %2129 = vmatmul.mubr.msk.bf16.gmra.mrb[36].mxu1 %vm895_vm0, %v1796_v7 }
  0xb6   :  { %2132 = vmatprep.mubr.msk.bf16.mxu1 %vm895_vm0, %v1803_v8  ;;  %2145 = vmatpush3.bf16.msra.mxu1 %v2235_v51 }
  0xb7   :  { %2146 = vmatprep.subr.bf16.mxu1 %v2236_v52 }
  0xba   :  { %2147 = vmatpush3.bf16.msra.mxu1 %v2236_v52 }
  0xbb   :  { %1163 = vmatmul.mubr.bf16.gmra.mrb[40].mxu0 %v1787_v17  ;;  %2148 = vmatprep.subr.bf16.mxu1 %v2237_v53 }
  0xbc   :  { %1170 = vmatprep.mubr.bf16.mxu0 %v1795_v20 }
  0xbd   :  { %2133 = vmatmul.mubr.msk.bf16.gmra.mrb[40].mxu1 %vm895_vm0, %v1810_v25 }
  0xbe   :  { %2136 = vmatprep.mubr.msk.bf16.mxu1 %vm895_vm0, %v1817_v33  ;;  %2149 = vmatpush3.bf16.msra.mxu1 %v2237_v53 }
  0xbf   :  { %2150 = vmatprep.subr.bf16.mxu1 %v2238_v54 }
  0xc2   :  { %2151 = vmatpush3.bf16.msra.mxu1 %v2238_v54 }
  0xc3   :  { %1171 = vmatmul.mubr.bf16.gmra.mrb[44].mxu0 %v1794_v31  ;;  %2152 = vmatprep.subr.bf16.mxu1 %v2239_v55 }
  0xc4   :  { %1178 = vmatprep.mubr.bf16.mxu0 %v1802_v32 }
  0xc5   :  { %2137 = vmatmul.mubr.msk.bf16.gmra.mrb[44].mxu1 %vm895_vm0, %v1824_v37 }
  0xc6   :  { %2153 = vmatpush3.bf16.msra.mxu1 %v2239_v55  ;;  %2156 = vmatprep.mubr.bf16.mxu1 %v2375_v57 }
  0xc7   :  { %2154 = vmatprep.subr.bf16.mxu1 %v2240_v56 }
  0xca   :  { %2155 = vmatpush3.bf16.msra.mxu1 %v2240_v56 }
  0xcb   :  { %1179 = vmatmul.mubr.bf16.gmra.mrb[48].mxu0 %v1801_v40 }
  0xcc   :  { %1186 = vmatprep.mubr.bf16.mxu0 %v1809_v41 }
  0xd3   :  { %1187 = vmatmul.mubr.bf16.gmra.mrb[52].mxu0 %v1808_v46 }
  0xd4   :  { %1194 = vmatprep.mubr.bf16.mxu0 %v1816_v47 }
  0xdb   :  { %1195 = vmatmul.mubr.bf16.gmra.mrb[56].mxu0 %v1815_v48 }
 0x13e   :  { %v1921_v58 = vpop.f32.mrb[0].mxu0 }
 0x13f   :  { %v1922_v60 = vpop.f32.mrb[1].mxu0 }
 0x140   :  { %v1923_v61 = vadd.f32 %v1922_v60, %v1921_v58  ;;  %v1924_v62 = vpop.f32.mrb[2].mxu0  ;;  %v1985_v63 = vpop.f32.mrb[0].mxu1 }
 0x141   :  { %v1925_v0 = vpop.f32.mrb[3].mxu0  ;;  %v1986_v3 = vpop.f32.mrb[1].mxu1 }
 0x142   :  { %v955_v1 = vadd.f32 %v1923_v61, %v2558_v59  ;;  %v1926_v2 = vadd.f32 %v1925_v0, %v1924_v62  ;;  %v1987_v4 = vadd.f32 %v1986_v3, %v1985_v63  ;;  %v1988_v5 = vpop.f32.mrb[2].mxu1 }
 0x143   :  { %v1989_v7 = vpop.f32.mrb[3].mxu1 }
 0x144   :  { %v958_v6 = vadd.f32 %v1926_v2, %v2558_v59  ;;  %v2562_v8 = vadd.f32 %v1987_v4, %v955_v1  ;;  %v1990_v9 = vadd.f32 %v1989_v7, %v1988_v5 }
 0x146   :  { %v1927_v10 = vpop.f32.mrb[4].mxu0  ;;  %v2564_v11 = vadd.f32 %v1990_v9, %v958_v6 }
 0x147   :  { %v1928_v12 = vpop.f32.mrb[5].mxu0 }
 0x148   :  { %v1929_v13 = vadd.f32 %v1928_v12, %v1927_v10  ;;  %v1930_v14 = vpop.f32.mrb[6].mxu0  ;;  %v1991_v15 = vpop.f32.mrb[4].mxu1 }
 0x149   :  { %v1931_v16 = vpop.f32.mrb[7].mxu0  ;;  %v1992_v19 = vpop.f32.mrb[5].mxu1 }
 0x14a   :  { %v963_v17 = vadd.f32 %v1929_v13, %v2558_v59  ;;  %v1932_v18 = vadd.f32 %v1931_v16, %v1930_v14  ;;  %v1993_v20 = vadd.f32 %v1992_v19, %v1991_v15  ;;  %v1994_v21 = vpop.f32.mrb[6].mxu1 }
 0x14b   :  { %v1995_v25 = vpop.f32.mrb[7].mxu1 }
 0x14c   :  { %v966_v22 = vadd.f32 %v1932_v18, %v2558_v59  ;;  %v2568_v33 = vadd.f32 %v1993_v20, %v963_v17  ;;  %v1996_v34 = vadd.f32 %v1995_v25, %v1994_v21 }
 0x14e   :  { %v1933_v26 = vpop.f32.mrb[8].mxu0  ;;  %v2570_v27 = vadd.f32 %v1996_v34, %v966_v22 }
 0x14f   :  { %v1934_v28 = vpop.f32.mrb[9].mxu0 }
 0x150   :  { %v1935_v29 = vadd.f32 %v1934_v28, %v1933_v26  ;;  %v1936_v30 = vpop.f32.mrb[10].mxu0  ;;  %v1997_v31 = vpop.f32.mrb[8].mxu1 }
 0x151   :  { %v1937_v32 = vpop.f32.mrb[11].mxu0  ;;  %v1998_v37 = vpop.f32.mrb[9].mxu1 }
 0x152   :  { %v971_v35 = vadd.f32 %v1935_v29, %v2558_v59  ;;  %v1938_v36 = vadd.f32 %v1937_v32, %v1936_v30  ;;  %v1999_v38 = vadd.f32 %v1998_v37, %v1997_v31  ;;  %v2000_v39 = vpop.f32.mrb[10].mxu1 }
 0x153   :  { %v2001_v41 = vpop.f32.mrb[11].mxu1 }
 0x154   :  { %v974_v40 = vadd.f32 %v1938_v36, %v2558_v59  ;;  %v2574_v43 = vadd.f32 %v1999_v38, %v971_v35  ;;  %v2002_v42 = vadd.f32 %v2001_v41, %v2000_v39 }
 0x156   :  { %v1939_v44 = vpop.f32.mrb[12].mxu0  ;;  %v2576_v45 = vadd.f32 %v2002_v42, %v974_v40 }
 0x157   :  { %v1940_v46 = vpop.f32.mrb[13].mxu0 }
 0x158   :  { %v1941_v47 = vadd.f32 %v1940_v46, %v1939_v44  ;;  %v1942_v48 = vpop.f32.mrb[14].mxu0  ;;  %v2003_v49 = vpop.f32.mrb[12].mxu1 }
 0x159   :  { %v1943_v50 = vpop.f32.mrb[15].mxu0  ;;  %v2004_v53 = vpop.f32.mrb[13].mxu1 }
 0x15a   :  { %v979_v51 = vadd.f32 %v1941_v47, %v2558_v59  ;;  %v1944_v52 = vadd.f32 %v1943_v50, %v1942_v48  ;;  %v2005_v54 = vadd.f32 %v2004_v53, %v2003_v49  ;;  %v2006_v55 = vpop.f32.mrb[14].mxu1 }
 0x15b   :  { %v2007_v57 = vpop.f32.mrb[15].mxu1 }
 0x15c   :  { %v982_v56 = vadd.f32 %v1944_v52, %v2558_v59  ;;  %v2580_v58 = vadd.f32 %v2005_v54, %v979_v51  ;;  %v2008_v60 = vadd.f32 %v2007_v57, %v2006_v55 }
 0x15e   :  { %v1945_v61 = vpop.f32.mrb[16].mxu0  ;;  %v2582_v62 = vadd.f32 %v2008_v60, %v982_v56 }
 0x15f   :  { %v1946_v63 = vpop.f32.mrb[17].mxu0 }
 0x160   :  { %v1947_v0 = vadd.f32 %v1946_v63, %v1945_v61  ;;  %v1948_v1 = vpop.f32.mrb[18].mxu0  ;;  %v2009_v2 = vpop.f32.mrb[16].mxu1 }
 0x161   :  { %v1949_v3 = vpop.f32.mrb[19].mxu0  ;;  %v2010_v6 = vpop.f32.mrb[17].mxu1 }
 0x162   :  { %v987_v4 = vadd.f32 %v1947_v0, %v2558_v59  ;;  %v1950_v5 = vadd.f32 %v1949_v3, %v1948_v1  ;;  %v2011_v7 = vadd.f32 %v2010_v6, %v2009_v2  ;;  %v2012_v9 = vpop.f32.mrb[18].mxu1 }
 0x163   :  { %v2013_v12 = vpop.f32.mrb[19].mxu1 }
 0x164   :  { %v990_v10 = vadd.f32 %v1950_v5, %v2558_v59  ;;  %v2586_v13 = vadd.f32 %v2011_v7, %v987_v4  ;;  %v2014_v14 = vadd.f32 %v2013_v12, %v2012_v9 }
 0x166   :  { %v1951_v15 = vpop.f32.mrb[20].mxu0  ;;  %v2588_v16 = vadd.f32 %v2014_v14, %v990_v10 }
 0x167   :  { %v1952_v17 = vpop.f32.mrb[21].mxu0 }
 0x168   :  { %v1953_v18 = vadd.f32 %v1952_v17, %v1951_v15  ;;  %v1954_v19 = vpop.f32.mrb[22].mxu0  ;;  %v2015_v20 = vpop.f32.mrb[20].mxu1 }
 0x169   :  { %v1955_v21 = vpop.f32.mrb[23].mxu0  ;;  %v2016_v34 = vpop.f32.mrb[21].mxu1 }
 0x16a   :  { %v995_v22 = vadd.f32 %v1953_v18, %v2558_v59  ;;  %v1956_v25 = vadd.f32 %v1955_v21, %v1954_v19  ;;  %v2017_v26 = vadd.f32 %v2016_v34, %v2015_v20  ;;  %v2018_v28 = vpop.f32.mrb[22].mxu1 }
 0x16b   :  { %v2019_v30 = vpop.f32.mrb[23].mxu1 }
 0x16c   :  { %v998_v29 = vadd.f32 %v1956_v25, %v2558_v59  ;;  %v2592_v31 = vadd.f32 %v2017_v26, %v995_v22  ;;  %v2020_v32 = vadd.f32 %v2019_v30, %v2018_v28 }
 0x16e   :  { %v1957_v35 = vpop.f32.mrb[24].mxu0  ;;  %v2594_v36 = vadd.f32 %v2020_v32, %v998_v29 }
 0x16f   :  { %v1958_v37 = vpop.f32.mrb[25].mxu0 }
 0x170   :  { %v1959_v38 = vadd.f32 %v1958_v37, %v1957_v35  ;;  %v1960_v39 = vpop.f32.mrb[26].mxu0  ;;  %v2021_v40 = vpop.f32.mrb[24].mxu1 }
 0x171   :  { %v1961_v41 = vpop.f32.mrb[27].mxu0  ;;  %v2022_v46 = vpop.f32.mrb[25].mxu1 }
 0x172   :  { %v1003_v42 = vadd.f32 %v1959_v38, %v2558_v59  ;;  %v1962_v44 = vadd.f32 %v1961_v41, %v1960_v39  ;;  %v2023_v47 = vadd.f32 %v2022_v46, %v2021_v40  ;;  %v2024_v48 = vpop.f32.mrb[26].mxu1 }
 0x173   :  { %v2025_v50 = vpop.f32.mrb[27].mxu1 }
 0x174   :  { %v1006_v49 = vadd.f32 %v1962_v44, %v2558_v59  ;;  %v2598_v51 = vadd.f32 %v2023_v47, %v1003_v42  ;;  %v2026_v52 = vadd.f32 %v2025_v50, %v2024_v48 }
 0x176   :  { %v1963_v53 = vpop.f32.mrb[28].mxu0  ;;  %v2600_v54 = vadd.f32 %v2026_v52, %v1006_v49 }
 0x177   :  { %v1964_v55 = vpop.f32.mrb[29].mxu0 }
 0x178   :  { %v1966_v56 = vpop.f32.mrb[30].mxu0  ;;  %v2027_v60 = vpop.f32.mrb[28].mxu1 }
 0x179   :  { %v1967_v57 = vpop.f32.mrb[31].mxu0  ;;  %v2028_v61 = vpop.f32.mrb[29].mxu1 }
 0x17a   :  { %v2030_v63 = vpop.f32.mrb[30].mxu1 }
 0x17b   :  { %v2031_v0 = vpop.f32.mrb[31].mxu1 }
 0x17e   :  { %v2049_v1 = vpop.f32.mrb[32].mxu0 }
 0x17f   :  { %v2050_v2 = vpop.f32.mrb[33].mxu0 }
 0x180   :  { %v2051_v3 = vadd.f32 %v2050_v2, %v2049_v1  ;;  %v2052_v4 = vpop.f32.mrb[34].mxu0  ;;  %v2126_v59 = vpop.f32.mrb[32].mxu1 }
 0x181   :  { %v2053_v5 = vpop.f32.mrb[35].mxu0  ;;  %v1245_v9 = vpop.f32.mrb[33].mxu1 }
 0x182   :  { %v2054_v6 = vadd.f32 %v2053_v5, %v2052_v4  ;;  %v1149_v7 = vadd.f32 %v2051_v3, %v2562_v8  ;;  %v2127_v10 = vpop.f32.mrb[34].mxu1 }
 0x183   :  { %v1248_v15 = vpop.f32.mrb[35].mxu1 }
 0x184   :  { %v1246_v12 = vadd.f32 %v1245_v9, %v1149_v7  ;;  %v1152_v14 = vadd.f32 %v2054_v6, %v2564_v11 }
 0x186   :  { %v1882_v17 = vadd.f32 -2.0, %v1246_v12  ;;  %v1249_v18 = vadd.f32 %v1248_v15, %v1152_v14  ;;  %v2055_v19 = vpop.f32.mrb[36].mxu0  ;;  %vm1334_vm1 = vcmp.gt.f32.partialorder %v1246_v12, 2.0 }
 0x187   :  { %v2056_v20 = vpop.f32.mrb[37].mxu0  ;;  %v1336_v8 = vsel %vm1334_vm1, 0.0, %v1246_v12 }
 0x188   :  { %v1883_v21 = vadd.f32 -2.0, %v1249_v18  ;;  %vm1335_vm2 = vcmp.gt.f32.partialorder %v1249_v18, 2.0  ;;  %v2058_v22 = vpop.f32.mrb[38].mxu0  ;;  %v2057_v25 = vadd.f32 %v2056_v20, %v2055_v19  ;;  %v2604_v26 = vpop.f32.mrb[36].mxu1  ;;  %v1332_v28 = vmax.f32 %v1882_v17, 0.0 }
 0x189   :  { %v2059_v34 = vpop.f32.mrb[39].mxu0  ;;  %v1261_v32 = vpop.f32.mrb[37].mxu1  ;;  %v1337_v35 = vsel %vm1335_vm2, 0.0, %v1249_v18  ;;  %v1342_v41 = vmul.f32 0.9, %v1336_v8 }
 0x18a   :  { %v1333_v29 = vmax.f32 %v1883_v21, 0.0  ;;  %v2060_v30 = vadd.f32 %v2059_v34, %v2058_v22  ;;  %v1157_v11 = vadd.f32 %v2057_v25, %v2568_v33  ;;  %v2607_v37 = vpop.f32.mrb[38].mxu1  ;;  %v1343_v44 = vmul.f32 0.9, %v1337_v35 }
 0x18b   :  { %v1264_v40 = vpop.f32.mrb[39].mxu1 }
 0x18c   :  { %v1449_v38 = vpack.c.bf16 %v1333_v29, %v1332_v28  ;;  %v1160_v39 = vadd.f32 %v2060_v30, %v2570_v27  ;;  %v1254_v42 = vadd.f32 %v2126_v59, %v1157_v11 }
 0x18e   :  { %v1257_v46 = vadd.f32 %v2127_v10, %v1160_v39  ;;  %v2061_v47 = vpop.f32.mrb[40].mxu0  ;;  %2157 = vmatmul.mubr.bf16.vlgmr.msra.gmra.mrb[48].mxu1 %v1449_v38  ;;  %v1344_v48 = vadd.f32 %v1342_v41, %v1254_v42 }
 0x18f   :  { %v2062_v49 = vpop.f32.mrb[41].mxu0 }
 0x190   :  { %v1345_v50 = vadd.f32 %v1343_v44, %v1257_v46  ;;  %v2063_v52 = vadd.f32 %v2062_v49, %v2061_v47  ;;  %v2064_v53 = vpop.f32.mrb[42].mxu0  ;;  %vm1350_vm3 = vcmp.gt.f32.partialorder %v1344_v48, 2.0  ;;  %v1884_v33 = vadd.f32 -2.0, %v1344_v48  ;;  %v2610_v56 = vpop.f32.mrb[40].mxu1 }
 0x191   :  { %v2065_v55 = vpop.f32.mrb[43].mxu0  ;;  %v1352_v60 = vsel %vm1350_vm3, 0.0, %v1344_v48  ;;  %v1277_v61 = vpop.f32.mrb[41].mxu1 }
 0x192   :  { %v2066_v57 = vadd.f32 %v2065_v55, %v2064_v53  ;;  %v1165_v27 = vadd.f32 %v2063_v52, %v2574_v43  ;;  %vm1351_vm4 = vcmp.gt.f32.partialorder %v1345_v50, 2.0  ;;  %v1885_v0 = vadd.f32 -2.0, %v1345_v50  ;;  %v2613_v1 = vpop.f32.mrb[42].mxu1 }
 0x193   :  { %v1353_v63 = vsel %vm1351_vm4, 0.0, %v1345_v50  ;;  %v1358_v3 = vmul.f32 0.9, %v1352_v60  ;;  %v1280_v5 = vpop.f32.mrb[43].mxu1  ;;  %v1348_v59 = vmax.f32 %v1884_v33, 0.0 }
 0x194   :  { %v1262_v2 = vadd.f32 %v1261_v32, %v1165_v27  ;;  %v1168_v4 = vadd.f32 %v2066_v57, %v2576_v45  ;;  %v1349_v6 = vmax.f32 %v1885_v0, 0.0  ;;  %v1359_v10 = vmul.f32 0.9, %v1353_v63 }
 0x196   :  { %v1360_v7 = vadd.f32 %v1358_v3, %v1262_v2  ;;  %v1265_v9 = vadd.f32 %v1264_v40, %v1168_v4  ;;  %v2067_v12 = vpop.f32.mrb[44].mxu0  ;;  %v1450_v43 = vpack.c.bf16 %v1349_v6, %v1348_v59 }
 0x197   :  { %v2068_v14 = vpop.f32.mrb[45].mxu0 }
 0x198   :  { %vm1366_vm5 = vcmp.gt.f32.partialorder %v1360_v7, 2.0  ;;  %v1361_v15 = vadd.f32 %v1359_v10, %v1265_v9  ;;  %v2069_v17 = vadd.f32 %v2068_v14, %v2067_v12  ;;  %v2070_v18 = vpop.f32.mrb[46].mxu0  ;;  %2160 = vmatprep.mubr.bf16.mxu1 %v1450_v43  ;;  %v1886_v21 = vadd.f32 -2.0, %v1360_v7  ;;  %v2138_v22 = vpop.f32.mrb[44].mxu1 }
 0x199   :  { %v1368_v19 = vsel %vm1366_vm5, 0.0, %v1360_v7  ;;  %v2071_v20 = vpop.f32.mrb[47].mxu0  ;;  %v2617_v34 = vpop.f32.mrb[45].mxu1 }
 0x19a   :  { %vm1367_vm6 = vcmp.gt.f32.partialorder %v1361_v15, 2.0  ;;  %v1173_v45 = vadd.f32 %v2069_v17, %v2580_v58  ;;  %v2072_v25 = vadd.f32 %v2071_v20, %v2070_v18  ;;  %v1887_v8 = vadd.f32 -2.0, %v1361_v15  ;;  %v2139_v29 = vpop.f32.mrb[46].mxu1 }
 0x19b   :  { %v1369_v28 = vsel %vm1367_vm6, 0.0, %v1361_v15  ;;  %v1374_v30 = vmul.f32 0.9, %v1368_v19  ;;  %v2621_v11 = vpop.f32.mrb[47].mxu1  ;;  %v1364_v38 = vmax.f32 %v1886_v21, 0.0 }
 0x19c   :  { %v1270_v32 = vadd.f32 %v2604_v26, %v1173_v45  ;;  %v1176_v35 = vadd.f32 %v2072_v25, %v2582_v62  ;;  %v1365_v39 = vmax.f32 %v1887_v8, 0.0  ;;  %v1375_v40 = vmul.f32 0.9, %v1369_v28 }
 0x19e   :  { %v1376_v41 = vadd.f32 %v1374_v30, %v1270_v32  ;;  %v1273_v42 = vadd.f32 %v2607_v37, %v1176_v35  ;;  %v2073_v58 = vpop.f32.mrb[48].mxu0  ;;  %v1451_v46 = vpack.c.bf16 %v1365_v39, %v1364_v38 }
 0x19f   :  { %v2074_v44 = vpop.f32.mrb[49].mxu0 }
 0x1a0   :  { %v1377_v47 = vadd.f32 %v1375_v40, %v1273_v42  ;;  %v2075_v48 = vadd.f32 %v2074_v44, %v2073_v58  ;;  %v2076_v49 = vpop.f32.mrb[50].mxu0  ;;  %vm1382_vm7 = vcmp.gt.f32.partialorder %v1376_v41, 2.0  ;;  %2161 = vmatmul.mubr.bf16.gmra.mrb[52].mxu1 %v1451_v46  ;;  %v1888_v52 = vadd.f32 -2.0, %v1376_v41 }
 0x1a1   :  { %v2077_v50 = vpop.f32.mrb[51].mxu0  ;;  %v1384_v26 = vsel %vm1382_vm7, 0.0, %v1376_v41 }
 0x1a2   :  { %v2078_v62 = vadd.f32 %v2077_v50, %v2076_v49  ;;  %v1181_v53 = vadd.f32 %v2075_v48, %v2586_v13  ;;  %vm1383_vm8 = vcmp.gt.f32.partialorder %v1377_v47, 2.0  ;;  %v1889_v33 = vadd.f32 -2.0, %v1377_v47 }
 0x1a3   :  { %v1385_v55 = vsel %vm1383_vm8, 0.0, %v1377_v47  ;;  %v1390_v27 = vmul.f32 0.9, %v1384_v26  ;;  %v1380_v60 = vmax.f32 %v1888_v52, 0.0 }
 0x1a4   :  { %v1278_v57 = vadd.f32 %v1277_v61, %v1181_v53  ;;  %v1184_v37 = vadd.f32 %v2078_v62, %v2588_v16  ;;  %v1381_v63 = vmax.f32 %v1889_v33, 0.0  ;;  %v1391_v3 = vmul.f32 0.9, %v1385_v55  ;;  %v138_v55 = vld [vmem:[#allocation4 + $0x198] sm:$0xff] }
 0x1a5   :  { %v210_v33 = vmul.bf16 %v2509_v23, %v138_v55 }
 0x1a6   :  { %v1392_v0 = vadd.f32 %v1390_v27, %v1278_v57  ;;  %v1281_v2 = vadd.f32 %v1280_v5, %v1184_v37  ;;  %v2079_v4 = vpop.f32.mrb[52].mxu0  ;;  %v1452_v6 = vpack.c.bf16 %v1381_v63, %v1380_v60 }
 0x1a7   :  { %v2080_v59 = vpop.f32.mrb[53].mxu0 }
 0x1a8   :  { %vm1398_vm9 = vcmp.gt.f32.partialorder %v1392_v0, 2.0  ;;  %v1393_v7 = vadd.f32 %v1391_v3, %v1281_v2  ;;  %v2081_v9 = vadd.f32 %v2080_v59, %v2079_v4  ;;  %v2082_v10 = vpop.f32.mrb[54].mxu0  ;;  %2164 = vmatprep.mubr.bf16.mxu1 %v1452_v6  ;;  %v1890_v14 = vadd.f32 -2.0, %v1392_v0 }
 0x1a9   :  { %v1400_v13 = vsel %vm1398_vm9, 0.0, %v1392_v0  ;;  %v2083_v12 = vpop.f32.mrb[55].mxu0 }
 0x1aa   :  { %vm1399_vm10 = vcmp.gt.f32.partialorder %v1393_v7, 2.0  ;;  %v1189_v61 = vadd.f32 %v2081_v9, %v2592_v31  ;;  %v2084_v16 = vadd.f32 %v2083_v12, %v2082_v10  ;;  %v1891_v15 = vadd.f32 -2.0, %v1393_v7 }
 0x1ab   :  { %v1401_v43 = vsel %vm1399_vm10, 0.0, %v1393_v7  ;;  %v1406_v17 = vmul.f32 0.9, %v1400_v13  ;;  %v1396_v19 = vmax.f32 %v1890_v14, 0.0 }
 0x1ac   :  { %v1286_v5 = vadd.f32 %v2610_v56, %v1189_v61  ;;  %v1192_v18 = vadd.f32 %v2084_v16, %v2594_v36  ;;  %v1397_v20 = vmax.f32 %v1891_v15, 0.0  ;;  %v1407_v21 = vmul.f32 0.9, %v1401_v43 }
 0x1ae   :  { %v1408_v22 = vadd.f32 %v1406_v17, %v1286_v5  ;;  %v1289_v45 = vadd.f32 %v2613_v1, %v1192_v18  ;;  %v2085_v25 = vpop.f32.mrb[56].mxu0  ;;  %v1453_v8 = vpack.c.bf16 %v1397_v20, %v1396_v19 }
 0x1af   :  { %v2086_v28 = vpop.f32.mrb[57].mxu0 }
 0x1b0   :  { %v1409_v29 = vadd.f32 %v1407_v21, %v1289_v45  ;;  %v2087_v30 = vadd.f32 %v2086_v28, %v2085_v25  ;;  %v2088_v31 = vpop.f32.mrb[58].mxu0  ;;  %vm1414_vm11 = vcmp.gt.f32.partialorder %v1408_v22, 2.0  ;;  %2165 = vmatmul.mubr.bf16.gmra.mrb[56].mxu1 %v1453_v8  ;;  %v1892_v38 = vadd.f32 -2.0, %v1408_v22 }
 0x1b1   :  { %v2089_v32 = vpop.f32.mrb[59].mxu0  ;;  %v1416_v35 = vsel %vm1414_vm11, 0.0, %v1408_v22 }
 0x1b2   :  { %v2090_v56 = vadd.f32 %v2089_v32, %v2088_v31  ;;  %v1197_v36 = vadd.f32 %v2087_v30, %v2598_v51  ;;  %vm1415_vm12 = vcmp.gt.f32.partialorder %v1409_v29, 2.0  ;;  %v1893_v40 = vadd.f32 -2.0, %v1409_v29 }
 0x1b3   :  { %v1417_v39 = vsel %vm1415_vm12, 0.0, %v1409_v29  ;;  %v1422_v1 = vmul.f32 0.9, %v1416_v35  ;;  %v1412_v58 = vmax.f32 %v1892_v38, 0.0 }
 0x1b4   :  { %v1294_v41 = vadd.f32 %v2617_v34, %v1197_v36  ;;  %v1200_v42 = vadd.f32 %v2090_v56, %v2600_v54  ;;  %v1413_v44 = vmax.f32 %v1893_v40, 0.0  ;;  %v1423_v48 = vmul.f32 0.9, %v1417_v39  ;;  %v142_v34 = vld [vmem:[#allocation4 + $0x1b4] sm:$0xff] }
 0x1b5   :  { %v214_v54 = vmul.bf16 %v2511_v24, %v142_v34 }
 0x1b6   :  { %v1424_v46 = vadd.f32 %v1422_v1, %v1294_v41  ;;  %v1297_v47 = vadd.f32 %v2621_v11, %v1200_v42  ;;  %v1454_v49 = vpack.c.bf16 %v1413_v44, %v1412_v58  ;;  %v2639_v11 = vld [vmem:[%s2672_s5] ss:$0 sm:$0xff]  ;;  %s2376_s5 = smov [#allocation12]  }
 0x1b7   :  { %v1823_v57 = vcombine.high %v210_v33, %v214_v54  ;;  %v1822_v27 = vcombine.low %v210_v33, %v214_v54  ;;  %s1754_s23 = sshll.u32 %s2376_s5, 4  ;;  %s1755_s23 = int_to_ptr.vmem [resolvable:$true] %s1754_s23 }
 0x1b8   :  { %v1894_v50 = vadd.f32 -2.0, %v1424_v46  ;;  %v1425_v26 = vadd.f32 %v1423_v48, %v1297_v47  ;;  %2168 = vmatprep.mubr.bf16.mxu1 %v1454_v49  ;;  %s2337_s25 = scalar_lea.vmem %s1755_s23, 256  ;;  %p2342_p5 = scmp.lt.s32.totalorder %s1755_s23, %s1755_s23 }
 0x1b9   :  { %1202 = vmatprep.mubr.bf16.mxu0 %v1823_v57  ;;  %p2338_p4 = scmp.ne.s32.totalorder %s1755_s23, %s2337_s25  ;;  %p2343_p6 = scmp.lt.s32.totalorder %s2337_s25, %s2337_s25 }
 0x1ba   :  { %v1895_v52 = vadd.f32 -2.0, %v1425_v26  ;;  %v1428_v51 = vmax.f32 %v1894_v50, 0.0  ;;  %1203 = vmatmul.mubr.bf16.gmra.mrb[60].mxu0 %v1822_v27 }
 0x1bb   :  { %p2344_p7 = por %p2343_p6, %p2342_p5 }
 0x1bc   :  { %v1429_v62 = vmax.f32 %v1895_v52, 0.0 }
 0x1bd   :  { %p2345_p8 = pnand %p2344_p7, %p2338_p4 }
 0x1be   :  { %v1455_v53 = vpack.c.bf16 %v1429_v62, %v1428_v51 }
 0x1c0   :  { %2169 = vmatmul.mubr.bf16.gmra.mrb[60].mxu1 %v1455_v53 }
 0x261   :  { %v2158_v37 = vpop.f32.mrb[48].mxu1 }
 0x262   :  { %v1561_v60 = vpop.f32.mrb[49].mxu1  ;;  %v1570_v24 = vadd.f32 %v2158_v37, %v2639_v11 }
 0x263   :  { %v1562_v63 = vadd.f32 %v2639_v11, %v1561_v60  ;;  %v2159_v0 = vpop.f32.mrb[50].mxu1 }
 0x264   :  { %v1564_v2 = vpop.f32.mrb[51].mxu1  ;;  %v1573_v7 = vadd.f32 %v2159_v0, %v2639_v11 }
 0x265   :  { %vm1644_vm13 = vcmp.gt.f32.partialorder %v1562_v63, 2.0  ;;  %v1565_v23 = vadd.f32 %v2639_v11, %v1564_v2 }
 0x266   :  { %v1646_v3 = vsel %vm1644_vm13, 0.0, %v1562_v63  ;;  %v1722_v63 = vlaneseq }
 0x267   :  { %v1650_v4 = vmul.f32 0.9, %v1646_v3  ;;  %vm1645_vm14 = vcmp.gt.f32.partialorder %v1565_v23, 2.0 }
 0x268   :  { %v1647_v59 = vsel %vm1645_vm14, 0.0, %v1565_v23 }
 0x269   :  { %v1652_v6 = vadd.f32 %v1650_v4, %v1570_v24  ;;  %v1651_v9 = vmul.f32 0.9, %v1647_v59 }
 0x26b   :  { %v1653_v10 = vadd.f32 %v1651_v9, %v1573_v7  ;;  %vm1654_vm15 = vcmp.gt.f32.partialorder %v1652_v6, 2.0  ;;  %v1723_v7 = vand.u32 127, %v1722_v63 }
 0x26c   :  { %v1656_v13 = vsel %vm1654_vm15, 0.0, %v1652_v6 }
 0x26d   :  { %vm1655_vm0 = vcmp.gt.f32.partialorder %v1653_v10, 2.0  ;;  %v1662_v43 = vmul.f32 0.9, %v1656_v13  ;;  %vm1724_vm11 = vcmp.lt.s32.totalorder %v1723_v7, 10 }
 0x26e   :  { %v1657_v61 = vsel %vm1655_vm0, 0.0, %v1653_v10 }
 0x26f   :  { %v1663_v19 = vmul.f32 0.9, %v1657_v61 }
 0x273   :  { %v2162_v12 = vpop.f32.mrb[52].mxu1 }
 0x274   :  { %v1577_v14 = vpop.f32.mrb[53].mxu1  ;;  %v1586_v22 = vadd.f32 %v2162_v12, %v2639_v11 }
 0x275   :  { %v1578_v16 = vadd.f32 %v2639_v11, %v1577_v14  ;;  %v2163_v15 = vpop.f32.mrb[54].mxu1 }
 0x276   :  { %v1580_v17 = vpop.f32.mrb[55].mxu1  ;;  %v1589_v8 = vadd.f32 %v2163_v15, %v2639_v11 }
 0x277   :  { %v1664_v5 = vadd.f32 %v1662_v43, %v1578_v16  ;;  %v1581_v18 = vadd.f32 %v2639_v11, %v1580_v17 }
 0x279   :  { %vm1666_vm1 = vcmp.gt.f32.partialorder %v1664_v5, 2.0  ;;  %v1665_v20 = vadd.f32 %v1663_v19, %v1581_v18 }
 0x27a   :  { %v1668_v21 = vsel %vm1666_vm1, 0.0, %v1664_v5 }
 0x27b   :  { %v1670_v45 = vadd.f32 %v1668_v21, %v1656_v13  ;;  %v1674_v25 = vmul.f32 0.9, %v1668_v21  ;;  %vm1667_vm2 = vcmp.gt.f32.partialorder %v1665_v20, 2.0 }
 0x27c   :  { %v1669_v28 = vsel %vm1667_vm2, 0.0, %v1665_v20 }
 0x27d   :  { %v1671_v29 = vadd.f32 %v1669_v28, %v1657_v61  ;;  %v1675_v30 = vmul.f32 0.9, %v1669_v28  ;;  %v1676_v31 = vadd.f32 %v1674_v25, %v1586_v22 }
 0x27f   :  { %vm1678_vm3 = vcmp.gt.f32.partialorder %v1676_v31, 2.0  ;;  %v1677_v32 = vadd.f32 %v1675_v30, %v1589_v8 }
 0x280   :  { %v1680_v35 = vsel %vm1678_vm3, 0.0, %v1676_v31 }
 0x281   :  { %v1682_v38 = vadd.f32 %v1680_v35, %v1670_v45  ;;  %vm1679_vm4 = vcmp.gt.f32.partialorder %v1677_v32, 2.0  ;;  %v1686_v1 = vmul.f32 0.9, %v1680_v35 }
 0x282   :  { %v1681_v56 = vsel %vm1679_vm4, 0.0, %v1677_v32 }
 0x283   :  { %v2166_v36 = vpop.f32.mrb[56].mxu1  ;;  %v1683_v39 = vadd.f32 %v1681_v56, %v1671_v29  ;;  %v1687_v47 = vmul.f32 0.9, %v1681_v56 }
 0x284   :  { %v1593_v40 = vpop.f32.mrb[57].mxu1  ;;  %v1602_v50 = vadd.f32 %v2166_v36, %v2639_v11 }
 0x285   :  { %v1594_v41 = vadd.f32 %v2639_v11, %v1593_v40  ;;  %v2167_v42 = vpop.f32.mrb[58].mxu1 }
 0x286   :  { %v1596_v58 = vpop.f32.mrb[59].mxu1  ;;  %v1605_v62 = vadd.f32 %v2167_v42, %v2639_v11 }
 0x287   :  { %v1688_v44 = vadd.f32 %v1686_v1, %v1594_v41  ;;  %v1597_v46 = vadd.f32 %v2639_v11, %v1596_v58 }
 0x289   :  { %vm1690_vm5 = vcmp.gt.f32.partialorder %v1688_v44, 2.0  ;;  %v1689_v48 = vadd.f32 %v1687_v47, %v1597_v46 }
 0x28a   :  { %v1692_v49 = vsel %vm1690_vm5, 0.0, %v1688_v44 }
 0x28b   :  { %v1694_v26 = vadd.f32 %v1692_v49, %v1682_v38  ;;  %v1698_v52 = vmul.f32 0.9, %v1692_v49  ;;  %vm1691_vm6 = vcmp.gt.f32.partialorder %v1689_v48, 2.0 }
 0x28c   :  { %v1693_v51 = vsel %vm1691_vm6, 0.0, %v1689_v48 }
 0x28d   :  { %v1695_v53 = vadd.f32 %v1693_v51, %v1683_v39  ;;  %v1699_v55 = vmul.f32 0.9, %v1693_v51  ;;  %v1700_v34 = vadd.f32 %v1698_v52, %v1602_v50  ;;  %v2091_v17 = vpop.f32.mrb[60].mxu0 }
 0x28e   :  { %v2092_v5 = vpop.f32.mrb[61].mxu0 }
 0x28f   :  { %vm1702_vm7 = vcmp.gt.f32.partialorder %v1700_v34, 2.0  ;;  %v1701_v33 = vadd.f32 %v1699_v55, %v1605_v62  ;;  %v2094_v18 = vpop.f32.mrb[62].mxu0 }
 0x290   :  { %v1704_v54 = vsel %vm1702_vm7, 0.0, %v1700_v34 }
 0x291   :  { %vm1703_vm8 = vcmp.gt.f32.partialorder %v1701_v33, 2.0  ;;  %v1706_v57 = vadd.f32 %v1704_v54, %v1694_v26  ;;  %v1710_v23 = vmul.f32 0.9, %v1704_v54 }
 0x292   :  { %v1705_v37 = vsel %vm1703_vm8, 0.0, %v1701_v33 }
 0x293   :  { %v2170_v27 = vpop.f32.mrb[60].mxu1  ;;  %v1707_v0 = vadd.f32 %v1705_v37, %v1695_v53  ;;  %v1711_v6 = vmul.f32 0.9, %v1705_v37 }
 0x294   :  { %v1609_v60 = vpop.f32.mrb[61].mxu1 }
 0x295   :  { %v1610_v2 = vadd.f32 %v2639_v11, %v1609_v60  ;;  %v2171_v3 = vpop.f32.mrb[62].mxu1 }
 0x296   :  { %v1612_v24 = vpop.f32.mrb[63].mxu1 }
 0x297   :  { %v1712_v4 = vadd.f32 %v1710_v23, %v1610_v2  ;;  %v1613_v59 = vadd.f32 %v2639_v11, %v1612_v24  ;;  %v2095_v11 = vpop.f32.mrb[63].mxu0 }
 0x299   :  { %vm1714_vm9 = vcmp.gt.f32.partialorder %v1712_v4, 2.0  ;;  %v1713_v9 = vadd.f32 %v1711_v6, %v1613_v59 }
 0x29a   :  { %v1716_v10 = vsel %vm1714_vm9, 0.0, %v1712_v4 }
 0x29b   :  { %vm1715_vm10 = vcmp.gt.f32.partialorder %v1713_v9, 2.0  ;;  %v1718_v13 = vadd.f32 %v1716_v10, %v1706_v57 }
 0x29c   :  { %v1717_v12 = vsel %vm1715_vm10, 0.0, %v1713_v9 }
 0x29d   :  { %v1720_v14 = vmul.f32 0.16666667, %v1718_v13  ;;  %v1719_v61 = vadd.f32 %v1717_v12, %v1707_v0 }
 0x29f   :  { %v1725_v16 = vsel %vm1724_vm11, %v1720_v14, -1e+30  ;;  %v1721_v43 = vmul.f32 0.16666667, %v1719_v61 }
 0x2a0   :  { %1727 = vmax.xlane.f32.xlu0 %v1725_v16 }
 0x2a1   :  { %v1726_v15 = vsel %vm1724_vm11, %v1721_v43, -1e+30 }
 0x2a4   :  { %1729 = vmax.xlane.f32.xlu0 %v1726_v15 }
 0x32d   :  { %v1728_v19 = vpop.xlane.xlu0 %1727 }
 0x32e   :  { %v1731_v20 = vsub.f32 %v1725_v16, %v1728_v19 }
 0x330   :  { %v1733_v21 = vmul.f32 1.442695, %v1731_v20 }
 0x331   :  { %v1730_v22 = vpop.xlane.xlu0 %1729 }
 0x332   :  { %v1732_v45 = vsub.f32 %v1726_v15, %v1730_v22  ;;  %2241 = vpow2.f32 %v1733_v21 }
 0x334   :  { %v1735_v25 = vmul.f32 1.442695, %v1732_v45 }
 0x336   :  { %2243 = vpow2.f32 %v1735_v25 }
 0x33c   :  { %v2242_v28 = vpop.eup %2241 }
 0x33d   :  { %1737 = vadd.xlane.f32.xlu1 %v2242_v28 }
 0x340   :  { %v2244_v8 = vpop.eup %2243 }
 0x341   :  { %1739 = vadd.xlane.f32.xlu1 %v2244_v8 }
 0x3ca   :  { %v1738_v29 = vpop.xlane.xlu1 %1737 }
 0x3cb   :  { %2245 = vlog2.f32 %v1738_v29 }
 0x3ce   :  { %v1740_v30 = vpop.xlane.xlu1 %1739 }
 0x3cf   :  { %2247 = vlog2.f32 %v1740_v30 }
 0x3d5   :  { %v2246_v31 = vpop.eup %2245 }
 0x3d6   :  { %v1742_v32 = vmul.f32 0.6931472, %v2246_v31 }
 0x3d8   :  { %v1745_v35 = vsub.f32 %v1731_v20, %v1742_v32 }
 0x3d9   :  { %v2248_v38 = vpop.eup %2247 }
 0x3da   :  { %1747 = vst [vmem:[#allocation12] sm:$0xff] %v1745_v35  ;;  %v1744_v56 = vmul.f32 0.6931472, %v2248_v38 }
 0x3dc   :  { %v1746_v36 = vsub.f32 %v1732_v45, %v1744_v56 }
 0x3de   :  { %1748 = vst [vmem:[#allocation12 + $0x8] sm:$0xff] %v1746_v36 }
 0x3df   :  { %2348 = shalt.err (!%p2345_p8)
}
 0x3e0   :  { %s2349_s28 = scalar_lea.hbm %s2673_s6, 256 }
 0x3e1   :  { %p2350_p9 = scmp.ne.s32.totalorder %s2673_s6, %s2349_s28  ;;  %p2353_p10 = scmp.lt.u32.totalorder %s2349_s28, %s2673_s6 }
 0x3e3   :  { %p2355_p11 = pnand %p2353_p10, %p2350_p9 }
 0x3e5   :  { %2358 = shalt.err (!%p2355_p11)
}
 0x3e6   :  { %s2377_s0 = smov 128   ;;  %s2378_s24 = smov 8  }
 0x3e7   :  { %1760 = dma.vmem_to_hbm [thread:$0]  %s1755_s23, 256, %s2673_s6, [#allocation6], %s2377_s0, %s2377_s0, %s2378_s24  }
 0x3e8   :  { %2365 = dma.done.wait [#allocation6], 256  }
 0x3e9   :  { %2366 = vsyncadd [#allocation6], 4294967040 }
 0x3ea   :  { %1764 = vsyncpa [#allocation5], 1 }
 0x3eb   :  { %1765 = vsyncpa [#allocation8], 1 }
 0x3ec   :  { %1766 = vsyncpa [#allocation11], 1 }
 0x3ed   :  { %1767 = vsyncpa [#allocation6], 1 }

</bundles_post_ra>
